<compile_context>
chip_gen: v7x
topology: tpu7x:2x2x1
jax: 0.10.0
libtpu: 0.0.40
codegen_flags: <defaults>
</compile_context>

<pallas_src>
import functools

import jax
import jax.numpy as jnp
from jax.experimental import pallas as pl
from jax.experimental.pallas import tpu as pltpu


def _round_up(a, b):
    return (a + b - 1) // b * b


def symbolic_kernel(x_ref, we_ref, be_ref, c2_ref, cb_ref, cbt_ref, wd_ref,
                    bd_ref, rec_ref, probs_ref, loss_ref, *, n_valid):
    i = pl.program_id(0)
    tile_m = x_ref.shape[0]
    R, K, _ = cb_ref.shape

    # ---- encoder: Linear(D_in -> dim); bf16 operands, f32 accumulation -----
    x_enc = jnp.dot(x_ref[...], we_ref[...],
                    preferred_element_type=jnp.float32) + be_ref[...]   # (TM, dim)

    # ---- residual quantizer (probabilistic / soft assignment) --------------
    residual = x_enc
    q_sum = jnp.zeros_like(x_enc)
    for r in range(R):                                   # small static loop
        cross = jnp.dot(residual.astype(jnp.bfloat16), cbt_ref[r],
                        preferred_element_type=jnp.float32)             # (TM, K)
        # softmax(-||r - c||^2) == softmax(2 r.c - ||c||^2): ||r||^2 cancels.
        logits = 2.0 * cross - c2_ref[r]                                 # (TM, K)
        m = jnp.max(logits, axis=-1, keepdims=True)
        e = jnp.exp(logits - m)
        probs = e / jnp.sum(e, axis=-1, keepdims=True)                   # softmax
        probs_ref[:, r * K:(r + 1) * K] = probs.astype(probs_ref.dtype)

        q = jnp.dot(probs.astype(jnp.bfloat16), cb_ref[r],
                    preferred_element_type=jnp.float32)                  # (TM, dim)
        q_sum = q_sum + q
        residual = residual - q

    # ---- decoder: Linear(dim -> D_in) ---------------------------------------
    x_rec = jnp.dot(q_sum.astype(jnp.bfloat16), wd_ref[...],
                    preferred_element_type=jnp.float32) + bd_ref[...]
    rec_ref[...] = x_rec.astype(rec_ref.dtype)

    # ---- per-tile commitment-loss partial (padded rows masked out) ----------
    row = i * tile_m + jax.lax.broadcasted_iota(jnp.int32, (tile_m, 1), 0)
    mask = (row < n_valid).astype(jnp.float32)
    err = x_enc - q_sum
    part = jnp.sum(err * err * mask)                      # scalar for this tile
    loss_ref[...] = jnp.full(loss_ref.shape, part, loss_ref.dtype)


def symbolic_forward(x, params, *, tile_m=512):
    """x: (B, T, D_in) float32. Returns (x_reconstructed, index_probs, inner_loss)."""
    B, T, D_in = x.shape
    W_enc, b_enc, codebook, W_dec, b_dec = params
    dim = W_enc.shape[1]
    R, K, _ = codebook.shape

    N = B * T
    # Keep M aligned to 128 (MXU rows, also v5e-friendly); don't over-pad tiny inputs.
    tile_m = _round_up(min(tile_m, _round_up(N, 128)), 128)
    N_pad = _round_up(N, tile_m)
    num_tiles = N_pad // tile_m

    # bf16 matmul operands (MXU native); biases / ||c||^2 stay f32.
    x_flat = jnp.pad(x.reshape(N, D_in).astype(jnp.bfloat16),
                     ((0, N_pad - N), (0, 0)))
    we = W_enc.astype(jnp.bfloat16)
    wd = W_dec.astype(jnp.bfloat16)
    cb = codebook.astype(jnp.bfloat16)                    # (R, K, dim)
    cbt = jnp.transpose(cb, (0, 2, 1))                    # (R, dim, K) pre-transposed
    c2 = jnp.sum(cb.astype(jnp.float32) ** 2, axis=-1).reshape(R, 1, K)

    kernel = functools.partial(symbolic_kernel, n_valid=N)

    out_shapes = (
        jax.ShapeDtypeStruct((N_pad, D_in), jnp.float32),        # reconstruction
        jax.ShapeDtypeStruct((N_pad, R * K), jnp.float32),       # probs (lane-dense)
        jax.ShapeDtypeStruct((num_tiles, 8, 128), jnp.float32),  # loss partials
    )

    rec, probs_flat, loss_parts = pl.pallas_call(
        kernel,
        out_shape=out_shapes,
        grid_spec=pltpu.PrefetchScalarGridSpec(
            num_scalar_prefetch=0,
            grid=(num_tiles,),
            in_specs=[
                pl.BlockSpec((tile_m, D_in), lambda i: (i, 0)),     # x tokens
                pl.BlockSpec((D_in, dim),    lambda i: (0, 0)),     # W_enc
                pl.BlockSpec((1, dim),       lambda i: (0, 0)),     # b_enc
                pl.BlockSpec((R, 1, K),      lambda i: (0, 0, 0)),  # ||c||^2
                pl.BlockSpec((R, K, dim),    lambda i: (0, 0, 0)),  # codebook
                pl.BlockSpec((R, dim, K),    lambda i: (0, 0, 0)),  # codebook^T
                pl.BlockSpec((dim, D_in),    lambda i: (0, 0)),     # W_dec
                pl.BlockSpec((1, D_in),      lambda i: (0, 0)),     # b_dec
            ],
            out_specs=[
                pl.BlockSpec((tile_m, D_in),  lambda i: (i, 0)),    # rec
                pl.BlockSpec((tile_m, R * K), lambda i: (i, 0)),    # probs
                pl.BlockSpec((1, 8, 128),     lambda i: (i, 0, 0)), # loss partials
            ],
        ),
        # All outputs are per-tile -> the token axis is fully parallel (megacore
        # sharding on v7x).  NOTE: raise vmem_limit_bytes here if tile_m is pushed
        # past ~1024; size it against v7x's 64 MiB physical VMEM.
        compiler_params=pltpu.CompilerParams(
            dimension_semantics=("parallel",)),
    )(x_flat, we, b_enc, c2, cb, cbt, wd, b_dec)

    x_reconstructed = rec[:N].reshape(B, T, D_in)
    index_probs = probs_flat[:N].reshape(B, T, R, K)   # free row-major reshape
    inner_loss = jnp.sum(loss_parts[:, 0, 0]) / (N * dim)
    return x_reconstructed, index_probs, inner_loss


def reference_forward(x, params):
    """Pure-JAX reference mirroring the kernel's numerics (bf16 matmul operands,
    f32 accumulation, softmax over 2*cross - ||c||^2).  This approximates the
    all-f32 module semantics to ~1e-2."""
    W_enc, b_enc, codebook, W_dec, b_dec = params
    B, T, D_in = x.shape
    R, K, dim = codebook.shape
    bf = jnp.bfloat16
    x_flat = x.reshape(-1, D_in).astype(bf)
    we, wd, cb = W_enc.astype(bf), W_dec.astype(bf), codebook.astype(bf)
    c2 = jnp.sum(cb.astype(jnp.float32) ** 2, axis=-1)           # (R, K)
    x_enc = jnp.dot(x_flat, we, preferred_element_type=jnp.float32) + b_enc
    residual = x_enc
    q_sum = jnp.zeros_like(x_enc)
    probs_all = []
    for r in range(R):
        cross = jnp.dot(residual.astype(bf), cb[r].T,
                        preferred_element_type=jnp.float32)
        logits = 2.0 * cross - c2[r][None, :]
        probs = jax.nn.softmax(logits, axis=-1)
        probs_all.append(probs)
        q = jnp.dot(probs.astype(bf), cb[r], preferred_element_type=jnp.float32)
        q_sum = q_sum + q
        residual = residual - q
    x_rec = jnp.dot(q_sum.astype(bf), wd, preferred_element_type=jnp.float32) + b_dec
    inner_loss = jnp.mean((x_enc - q_sum) ** 2)
    index_probs = jnp.stack(probs_all, axis=1).reshape(B, T, R, K)
    return x_rec.reshape(B, T, D_in), index_probs, inner_loss


def init_params(key, D_in, dim, R, K):
    k1, k2, k3, k4, k5 = jax.random.split(key, 5)
    W_enc = jax.random.normal(k1, (D_in, dim), jnp.float32) * 0.1
    b_enc = jax.random.normal(k2, (1, dim), jnp.float32) * 0.01
    codebook = jax.random.normal(k3, (R, K, dim), jnp.float32) * 0.5
    W_dec = jax.random.normal(k4, (dim, D_in), jnp.float32) * 0.1
    b_dec = jax.random.normal(k5, (1, D_in), jnp.float32) * 0.01
    return W_enc, b_enc, codebook, W_dec, b_dec


if __name__ == "__main__":
    B, T, D_in = 2, 16, 16
    dim, R, K = 32, 2, 256

    key = jax.random.PRNGKey(0)
    kx, kp = jax.random.split(key)
    x = jax.random.normal(kx, (B, T, D_in), jnp.float32)
    params = init_params(kp, D_in, dim, R, K)

    x_rec, index_probs, inner_loss = symbolic_forward(x, params)
    jax.block_until_ready((x_rec, index_probs, inner_loss))

    # sanity check against a pure-JAX reference with identical numerics
    r_rec, r_probs, r_loss = reference_forward(x, params)
    assert x_rec.shape == (B, T, D_in)
    assert index_probs.shape == (B, T, R, K)
    assert jnp.allclose(x_rec, r_rec, atol=2e-3, rtol=2e-3)
    assert jnp.allclose(index_probs, r_probs, atol=2e-3, rtol=2e-3)
    assert jnp.allclose(inner_loss, r_loss, atol=2e-3, rtol=2e-3)

    print("KERNEL_OK")
</pallas_src>

<mosaic_0001>
module attributes {stable_mosaic.version = 11 : i64} {
  func.func @symbolic_kernel(%arg0: i32, %arg1: memref<128x16xbf16, #tpu.memory_space<vmem>>, %arg2: memref<16x32xbf16, #tpu.memory_space<vmem>>, %arg3: memref<1x32xf32, #tpu.memory_space<vmem>>, %arg4: memref<2x1x256xf32, #tpu.memory_space<vmem>>, %arg5: memref<2x256x32xbf16, #tpu.memory_space<vmem>>, %arg6: memref<2x32x256xbf16, #tpu.memory_space<vmem>>, %arg7: memref<32x16xbf16, #tpu.memory_space<vmem>>, %arg8: memref<1x16xf32, #tpu.memory_space<vmem>>, %arg9: memref<128x16xf32, #tpu.memory_space<vmem>>, %arg10: memref<128x512xf32, #tpu.memory_space<vmem>>, %arg11: memref<1x8x128xf32, #tpu.memory_space<vmem>>) attributes {dimension_semantics = [#tpu.dimension_semantics<parallel>], iteration_bounds = array<i64: 1>, scalar_prefetch = 0 : i64, scratch_operands = 0 : i64, tpu.core_type = #tpu.core_type<tc>, window_params = [{transform_indices = @transform_0, window_bounds = array<i64: 128, 16>}, {pipeline_mode = #tpu.pipeline_mode<synchronous>, transform_indices = @transform_1, window_bounds = array<i64: 16, 32>}, {pipeline_mode = #tpu.pipeline_mode<synchronous>, transform_indices = @transform_2, window_bounds = array<i64: 1, 32>}, {pipeline_mode = #tpu.pipeline_mode<synchronous>, transform_indices = @transform_3, window_bounds = array<i64: 2, 1, 256>}, {pipeline_mode = #tpu.pipeline_mode<synchronous>, transform_indices = @transform_4, window_bounds = array<i64: 2, 256, 32>}, {pipeline_mode = #tpu.pipeline_mode<synchronous>, transform_indices = @transform_5, window_bounds = array<i64: 2, 32, 256>}, {pipeline_mode = #tpu.pipeline_mode<synchronous>, transform_indices = @transform_6, window_bounds = array<i64: 32, 16>}, {pipeline_mode = #tpu.pipeline_mode<synchronous>, transform_indices = @transform_7, window_bounds = array<i64: 1, 16>}, {transform_indices = @transform_8, window_bounds = array<i64: 128, 16>}, {transform_indices = @transform_9, window_bounds = array<i64: 128, 512>}, {transform_indices = @transform_10, window_bounds = array<i64: 1, 8, 128>}]} {
    %c0 = arith.constant 0 : index
    %c0_0 = arith.constant 0 : index
    %0 = vector.load %arg1[%c0, %c0_0] : memref<128x16xbf16, #tpu.memory_space<vmem>>, vector<128x16xbf16>
    %c0_1 = arith.constant 0 : index
    %c0_2 = arith.constant 0 : index
    %1 = vector.load %arg2[%c0_1, %c0_2] : memref<16x32xbf16, #tpu.memory_space<vmem>>, vector<16x32xbf16>
    %cst = arith.constant dense<0.000000e+00> : vector<128x32xf32>
    %2 = tpu.matmul %0, %1, %cst {dimension_numbers = #tpu.dot_dimension_numbers<[1], [0], [0], [1], [0, 0, 1, 1], [], []>} : vector<128x16xbf16>, vector<16x32xbf16>, vector<128x32xf32> -> vector<128x32xf32>
    %c0_3 = arith.constant 0 : index
    %c0_4 = arith.constant 0 : index
    %3 = vector.load %arg3[%c0_3, %c0_4] : memref<1x32xf32, #tpu.memory_space<vmem>>, vector<1x32xf32>
    %4 = vector.broadcast %3 : vector<1x32xf32> to vector<128x32xf32>
    %5 = arith.addf %2, %4 : vector<128x32xf32>
    %cst_5 = arith.constant 0.000000e+00 : f32
    %6 = vector.broadcast %cst_5 : f32 to vector<128x32xf32>
    %7 = arith.truncf %5 : vector<128x32xf32> to vector<128x32xbf16>
    %c0_6 = arith.constant 0 : index
    %c0_7 = arith.constant 0 : index
    %c0_8 = arith.constant 0 : index
    %8 = vector.load %arg6[%c0_6, %c0_7, %c0_8] : memref<2x32x256xbf16, #tpu.memory_space<vmem>>, vector<1x32x256xbf16>
    %9 = vector.shape_cast %8 : vector<1x32x256xbf16> to vector<32x256xbf16>
    %cst_9 = arith.constant dense<0.000000e+00> : vector<128x256xf32>
    %10 = tpu.matmul %7, %9, %cst_9 {dimension_numbers = #tpu.dot_dimension_numbers<[1], [0], [0], [1], [0, 0, 1, 1], [], []>} : vector<128x32xbf16>, vector<32x256xbf16>, vector<128x256xf32> -> vector<128x256xf32>
    %cst_10 = arith.constant 2.000000e+00 : f32
    %11 = vector.broadcast %cst_10 : f32 to vector<128x256xf32>
    %12 = arith.mulf %11, %10 : vector<128x256xf32>
    %c0_11 = arith.constant 0 : index
    %c0_12 = arith.constant 0 : index
    %c0_13 = arith.constant 0 : index
    %13 = vector.load %arg4[%c0_11, %c0_12, %c0_13] : memref<2x1x256xf32, #tpu.memory_space<vmem>>, vector<1x1x256xf32>
    %14 = vector.shape_cast %13 : vector<1x1x256xf32> to vector<1x256xf32>
    %15 = vector.broadcast %14 : vector<1x256xf32> to vector<128x256xf32>
    %16 = arith.subf %12, %15 : vector<128x256xf32>
    %cst_14 = arith.constant dense<0xFF800000> : vector<128xf32>
    %17 = vector.multi_reduction <maximumf>, %16, %cst_14 [1] : vector<128x256xf32> to vector<128xf32>
    %18 = vector.shape_cast %17 : vector<128xf32> to vector<128x1xf32>
    %19 = vector.broadcast %18 : vector<128x1xf32> to vector<128x256xf32>
    %20 = arith.subf %16, %19 : vector<128x256xf32>
    %21 = math.exp %20 : vector<128x256xf32>
    %cst_15 = arith.constant dense<0.000000e+00> : vector<128xf32>
    %22 = vector.multi_reduction <add>, %21, %cst_15 [1] : vector<128x256xf32> to vector<128xf32>
    %23 = vector.shape_cast %22 : vector<128xf32> to vector<128x1xf32>
    %24 = vector.broadcast %23 : vector<128x1xf32> to vector<128x256xf32>
    %25 = arith.divf %21, %24 : vector<128x256xf32>
    %c0_16 = arith.constant 0 : index
    %c0_17 = arith.constant 0 : index
    %26 = vector.load %arg10[%c0_16, %c0_17] : memref<128x512xf32, #tpu.memory_space<vmem>>, vector<128x256xf32>
    tpu.vector_store %arg10[%c0_16, %c0_17], %25 {strides = array<i32>} : memref<128x512xf32, #tpu.memory_space<vmem>>, vector<128x256xf32>,
    %27 = arith.truncf %25 : vector<128x256xf32> to vector<128x256xbf16>
    %c0_18 = arith.constant 0 : index
    %c0_19 = arith.constant 0 : index
    %c0_20 = arith.constant 0 : index
    %28 = vector.load %arg5[%c0_18, %c0_19, %c0_20] : memref<2x256x32xbf16, #tpu.memory_space<vmem>>, vector<1x256x32xbf16>
    %29 = vector.shape_cast %28 : vector<1x256x32xbf16> to vector<256x32xbf16>
    %cst_21 = arith.constant dense<0.000000e+00> : vector<128x32xf32>
    %30 = tpu.matmul %27, %29, %cst_21 {dimension_numbers = #tpu.dot_dimension_numbers<[1], [0], [0], [1], [0, 0, 1, 1], [], []>} : vector<128x256xbf16>, vector<256x32xbf16>, vector<128x32xf32> -> vector<128x32xf32>
    %31 = arith.addf %6, %30 : vector<128x32xf32>
    %32 = arith.subf %5, %30 : vector<128x32xf32>
    %33 = arith.truncf %32 : vector<128x32xf32> to vector<128x32xbf16>
    %c1 = arith.constant 1 : index
    %c0_22 = arith.constant 0 : index
    %c0_23 = arith.constant 0 : index
    %34 = vector.load %arg6[%c1, %c0_22, %c0_23] : memref<2x32x256xbf16, #tpu.memory_space<vmem>>, vector<1x32x256xbf16>
    %35 = vector.shape_cast %34 : vector<1x32x256xbf16> to vector<32x256xbf16>
    %cst_24 = arith.constant dense<0.000000e+00> : vector<128x256xf32>
    %36 = tpu.matmul %33, %35, %cst_24 {dimension_numbers = #tpu.dot_dimension_numbers<[1], [0], [0], [1], [0, 0, 1, 1], [], []>} : vector<128x32xbf16>, vector<32x256xbf16>, vector<128x256xf32> -> vector<128x256xf32>
    %cst_25 = arith.constant 2.000000e+00 : f32
    %37 = vector.broadcast %cst_25 : f32 to vector<128x256xf32>
    %38 = arith.mulf %37, %36 : vector<128x256xf32>
    %c1_26 = arith.constant 1 : index
    %c0_27 = arith.constant 0 : index
    %c0_28 = arith.constant 0 : index
    %39 = vector.load %arg4[%c1_26, %c0_27, %c0_28] : memref<2x1x256xf32, #tpu.memory_space<vmem>>, vector<1x1x256xf32>
    %40 = vector.shape_cast %39 : vector<1x1x256xf32> to vector<1x256xf32>
    %41 = vector.broadcast %40 : vector<1x256xf32> to vector<128x256xf32>
    %42 = arith.subf %38, %41 : vector<128x256xf32>
    %cst_29 = arith.constant dense<0xFF800000> : vector<128xf32>
    %43 = vector.multi_reduction <maximumf>, %42, %cst_29 [1] : vector<128x256xf32> to vector<128xf32>
    %44 = vector.shape_cast %43 : vector<128xf32> to vector<128x1xf32>
    %45 = vector.broadcast %44 : vector<128x1xf32> to vector<128x256xf32>
    %46 = arith.subf %42, %45 : vector<128x256xf32>
    %47 = math.exp %46 : vector<128x256xf32>
    %cst_30 = arith.constant dense<0.000000e+00> : vector<128xf32>
    %48 = vector.multi_reduction <add>, %47, %cst_30 [1] : vector<128x256xf32> to vector<128xf32>
    %49 = vector.shape_cast %48 : vector<128xf32> to vector<128x1xf32>
    %50 = vector.broadcast %49 : vector<128x1xf32> to vector<128x256xf32>
    %51 = arith.divf %47, %50 : vector<128x256xf32>
    %c0_31 = arith.constant 0 : index
    %c256 = arith.constant 256 : index
    %52 = vector.load %arg10[%c0_31, %c256] : memref<128x512xf32, #tpu.memory_space<vmem>>, vector<128x256xf32>
    tpu.vector_store %arg10[%c0_31, %c256], %51 {strides = array<i32>} : memref<128x512xf32, #tpu.memory_space<vmem>>, vector<128x256xf32>,
    %53 = arith.truncf %51 : vector<128x256xf32> to vector<128x256xbf16>
    %c1_32 = arith.constant 1 : index
    %c0_33 = arith.constant 0 : index
    %c0_34 = arith.constant 0 : index
    %54 = vector.load %arg5[%c1_32, %c0_33, %c0_34] : memref<2x256x32xbf16, #tpu.memory_space<vmem>>, vector<1x256x32xbf16>
    %55 = vector.shape_cast %54 : vector<1x256x32xbf16> to vector<256x32xbf16>
    %cst_35 = arith.constant dense<0.000000e+00> : vector<128x32xf32>
    %56 = tpu.matmul %53, %55, %cst_35 {dimension_numbers = #tpu.dot_dimension_numbers<[1], [0], [0], [1], [0, 0, 1, 1], [], []>} : vector<128x256xbf16>, vector<256x32xbf16>, vector<128x32xf32> -> vector<128x32xf32>
    %57 = arith.addf %31, %56 : vector<128x32xf32>
    %58 = arith.truncf %57 : vector<128x32xf32> to vector<128x32xbf16>
    %c0_36 = arith.constant 0 : index
    %c0_37 = arith.constant 0 : index
    %59 = vector.load %arg7[%c0_36, %c0_37] : memref<32x16xbf16, #tpu.memory_space<vmem>>, vector<32x16xbf16>
    %cst_38 = arith.constant dense<0.000000e+00> : vector<128x16xf32>
    %60 = tpu.matmul %58, %59, %cst_38 {dimension_numbers = #tpu.dot_dimension_numbers<[1], [0], [0], [1], [0, 0, 1, 1], [], []>} : vector<128x32xbf16>, vector<32x16xbf16>, vector<128x16xf32> -> vector<128x16xf32>
    %c0_39 = arith.constant 0 : index
    %c0_40 = arith.constant 0 : index
    %61 = vector.load %arg8[%c0_39, %c0_40] : memref<1x16xf32, #tpu.memory_space<vmem>>, vector<1x16xf32>
    %62 = vector.broadcast %61 : vector<1x16xf32> to vector<128x16xf32>
    %63 = arith.addf %60, %62 : vector<128x16xf32>
    %c0_41 = arith.constant 0 : index
    %c0_42 = arith.constant 0 : index
    %64 = vector.load %arg9[%c0_41, %c0_42] : memref<128x16xf32, #tpu.memory_space<vmem>>, vector<128x16xf32>
    tpu.vector_store %arg9[%c0_41, %c0_42], %63 {strides = array<i32>} : memref<128x16xf32, #tpu.memory_space<vmem>>, vector<128x16xf32>,
    %c128_i32 = arith.constant 128 : i32
    %65 = arith.muli %arg0, %c128_i32 : i32
    %66 = tpu.iota {dimensions = array<i32: 0>} : vector<128x1xi32>
    %67 = vector.broadcast %65 : i32 to vector<128x1xi32>
    %68 = arith.addi %67, %66 : vector<128x1xi32>
    %c32_i32 = arith.constant 32 : i32
    %69 = vector.broadcast %c32_i32 : i32 to vector<128x1xi32>
    %70 = arith.cmpi slt, %68, %69 : vector<128x1xi32>
    %71 = arith.extui %70 : vector<128x1xi1> to vector<128x1xi32>
    %72 = arith.sitofp %71 : vector<128x1xi32> to vector<128x1xf32>
    %73 = arith.subf %5, %57 : vector<128x32xf32>
    %74 = arith.mulf %73, %73 : vector<128x32xf32>
    %75 = vector.broadcast %72 : vector<128x1xf32> to vector<128x32xf32>
    %76 = arith.mulf %74, %75 : vector<128x32xf32>
    %77 = vector.shape_cast %76 : vector<128x32xf32> to vector<1x128x32xf32>
    %cst_43 = arith.constant dense<0.000000e+00> : vector<1xf32>
    %78 = vector.multi_reduction <add>, %77, %cst_43 [1, 2] : vector<1x128x32xf32> to vector<1xf32>
    %79 = vector.shape_cast %78 : vector<1xf32> to vector<1x1x1xf32>
    %80 = vector.extract %79[0, 0, 0] : f32 from vector<1x1x1xf32>
    %81 = vector.broadcast %80 : f32 to vector<1x8x128xf32>
    %c0_44 = arith.constant 0 : index
    %c0_45 = arith.constant 0 : index
    %c0_46 = arith.constant 0 : index
    %82 = vector.load %arg11[%c0_44, %c0_45, %c0_46] : memref<1x8x128xf32, #tpu.memory_space<vmem>>, vector<1x8x128xf32>
    tpu.vector_store %arg11[%c0_44, %c0_45, %c0_46], %81 {strides = array<i32>} : memref<1x8x128xf32, #tpu.memory_space<vmem>>, vector<1x8x128xf32>,
    return
  }
  func.func @transform_0(%arg0: i32) -> (i32, i32) {
    %c0_i32 = arith.constant 0 : i32
    %c0_i32_0 = arith.constant 0 : i32
    return %arg0, %c0_i32 : i32, i32
  }
  func.func @transform_1(%arg0: i32) -> (i32, i32) {
    %c0_i32 = arith.constant 0 : i32
    %c0_i32_0 = arith.constant 0 : i32
    %c0_i32_1 = arith.constant 0 : i32
    return %c0_i32, %c0_i32_0 : i32, i32
  }
  func.func @transform_2(%arg0: i32) -> (i32, i32) {
    %c0_i32 = arith.constant 0 : i32
    %c0_i32_0 = arith.constant 0 : i32
    %c0_i32_1 = arith.constant 0 : i32
    return %c0_i32, %c0_i32_0 : i32, i32
  }
  func.func @transform_3(%arg0: i32) -> (i32, i32, i32) {
    %c0_i32 = arith.constant 0 : i32
    %c0_i32_0 = arith.constant 0 : i32
    %c0_i32_1 = arith.constant 0 : i32
    %c0_i32_2 = arith.constant 0 : i32
    return %c0_i32, %c0_i32_0, %c0_i32_1 : i32, i32, i32
  }
  func.func @transform_4(%arg0: i32) -> (i32, i32, i32) {
    %c0_i32 = arith.constant 0 : i32
    %c0_i32_0 = arith.constant 0 : i32
    %c0_i32_1 = arith.constant 0 : i32
    %c0_i32_2 = arith.constant 0 : i32
    return %c0_i32, %c0_i32_0, %c0_i32_1 : i32, i32, i32
  }
  func.func @transform_5(%arg0: i32) -> (i32, i32, i32) {
    %c0_i32 = arith.constant 0 : i32
    %c0_i32_0 = arith.constant 0 : i32
    %c0_i32_1 = arith.constant 0 : i32
    %c0_i32_2 = arith.constant 0 : i32
    return %c0_i32, %c0_i32_0, %c0_i32_1 : i32, i32, i32
  }
  func.func @transform_6(%arg0: i32) -> (i32, i32) {
    %c0_i32 = arith.constant 0 : i32
    %c0_i32_0 = arith.constant 0 : i32
    %c0_i32_1 = arith.constant 0 : i32
    return %c0_i32, %c0_i32_0 : i32, i32
  }
  func.func @transform_7(%arg0: i32) -> (i32, i32) {
    %c0_i32 = arith.constant 0 : i32
    %c0_i32_0 = arith.constant 0 : i32
    %c0_i32_1 = arith.constant 0 : i32
    return %c0_i32, %c0_i32_0 : i32, i32
  }
  func.func @transform_8(%arg0: i32) -> (i32, i32) {
    %c0_i32 = arith.constant 0 : i32
    %c0_i32_0 = arith.constant 0 : i32
    return %arg0, %c0_i32 : i32, i32
  }
  func.func @transform_9(%arg0: i32) -> (i32, i32) {
    %c0_i32 = arith.constant 0 : i32
    %c0_i32_0 = arith.constant 0 : i32
    return %arg0, %c0_i32 : i32, i32
  }
  func.func @transform_10(%arg0: i32) -> (i32, i32, i32) {
    %c0_i32 = arith.constant 0 : i32
    %c0_i32_0 = arith.constant 0 : i32
    %c0_i32_1 = arith.constant 0 : i32
    return %arg0, %c0_i32, %c0_i32_0 : i32, i32, i32
  }
}

</mosaic_0001>

<bundles_post_ra>
// kernel: tpu_custom_call.1
= control target key start
LH: loop header
LB: loop body
LE: loop exit
PB: predicated region body
PF: predicated region fallthrough
CT: control target
= control target key end

     0   :  { %16 = vsyncpa [#allocation3], 0  ;;  %vm106_vm0 = vcmask 130048   ;;  %s3915_s0 = inlined_call_operand.vmem [shape: bf16[128,16], index: 0, kind: input, shape index: {}]   ;;  %s3916_s1 = inlined_call_operand.vmem [shape: bf16[16,32], index: 1, kind: input, shape index: {}]   ;;  %s3917_s2 = inlined_call_operand.vmem [shape: f32[1,32], index: 2, kind: input, shape index: {}]   ;;  %s3918_s3 = inlined_call_operand.vmem [shape: f32[2,1,256], index: 3, kind: input, shape index: {}]   ;;  %s3919_s4 = inlined_call_operand.vmem [shape: bf16[2,256,32], index: 4, kind: input, shape index: {}]   ;;  %s3920_s5 = inlined_call_operand.vmem [shape: bf16[2,32,256], index: 5, kind: input, shape index: {}]   ;;  %s3921_s6 = inlined_call_operand.vmem [shape: bf16[32,16], index: 6, kind: input, shape index: {}]   ;;  %s3922_s7 = inlined_call_operand.vmem [shape: f32[1,16], index: 7, kind: input, shape index: {}]   ;;  %s3923_s8 = inlined_call_operand.vmem [shape: f32[128,16], index: 8, kind: output, shape index: {0}]   ;;  %s3924_s9 = inlined_call_operand.hbm [shape: f32[128,512], index: 9, kind: output, shape index: {1}]   ;;  %s3925_s10 = inlined_call_operand.hbm [shape: f32[1,8,128], index: 10, kind: output, shape index: {2}]  }
   0x1   :  { %v2485_v0 = vld [vmem:[%s3916_s1] sm:$0xff]   ;;  %v2487_v2 = vld [vmem:[%s3915_s0 + $0x8] sm:$0xff]   ;;  %v2488_v3 = vld [vmem:[%s3915_s0 + $0x10] sm:$0xff]  }
   0x2   :  { %v2486_v1 = vld [vmem:[%s3915_s0] sm:$0xff]   ;;  %2440 = vmatprep.subr.bf16.mxu0 %v2485_v0  ;;  %v2489_v4 = vld [vmem:[%s3915_s0 + $0x18] sm:$0xff]   ;;  %v2491_v6 = vld [vmem:[%s3915_s0 + $0x28] sm:$0xff]  }
   0x3   :  { %2441 = vmatpush3.bf16.msra.mxu0 %v2485_v0  ;;  %2442 = vmatprep.mubr.msk.bf16.mxu0 %vm106_vm0, %v2486_v1  ;;  %v2490_v5 = vld [vmem:[%s3915_s0 + $0x20] sm:$0xff]   ;;  %v2492_v7 = vld [vmem:[%s3915_s0 + $0x30] sm:$0xff]   ;;  %v2493_v8 = vld [vmem:[%s3915_s0 + $0x38] sm:$0xff]  }
   0x6   :  { %2443 = vmatmul.mubr.msk.bf16.vlgmr.msra.gmra.mrb[0].mxu0 %vm106_vm0, %v2487_v2 }
   0x7   :  { %2446 = vmatprep.mubr.msk.bf16.mxu0 %vm106_vm0, %v2488_v3 }
   0xe   :  { %2447 = vmatmul.mubr.msk.bf16.gmra.mrb[4].mxu0 %vm106_vm0, %v2489_v4 }
   0xf   :  { %2450 = vmatprep.mubr.msk.bf16.mxu0 %vm106_vm0, %v2490_v5 }
  0x16   :  { %2451 = vmatmul.mubr.msk.bf16.gmra.mrb[8].mxu0 %vm106_vm0, %v2491_v6 }
  0x17   :  { %2454 = vmatprep.mubr.msk.bf16.mxu0 %vm106_vm0, %v2492_v7 }
  0x1e   :  { %2455 = vmatmul.mubr.msk.bf16.gmra.mrb[12].mxu0 %vm106_vm0, %v2493_v8 }
  0x1f   :  { %17 = vsyncpa [#allocation5], 0  ;;  %v2494_v9 = vld [vmem:[%s3920_s5 + $0x4] ss:$8 sps:$4 sm:$0xff]   ;;  %v2496_v10 = vld [vmem:[%s3920_s5] ss:$8 sps:$4 sm:$0xff]   ;;  %v432_v55 = vlaneseq }
  0x20   :  { %285 = vmatprep.subr.bf16.mxu1 %v2494_v9  ;;  %v2497_v11 = vld [vmem:[%s3920_s5 + $0x14] ss:$8 sps:$4 sm:$0xff]   ;;  %v2499_v12 = vld [vmem:[%s3920_s5 + $0x10] ss:$8 sps:$4 sm:$0xff]   ;;  %v2780_v13 = vmov 0   ;;  %vm260_vm1 = vcmask 261120  }
  0x21   :  { %286 = vmatpush1.bf16.msra.mxu1 %v2496_v10  ;;  %317 = vmatprep.mubr.bf16.mxu1 %v2780_v13  ;;  %v2171_v15 = vld [vmem:[%s3917_s2] ss:$0 sm:$0xff]  ;;  %v2955_v56 = vshrl.u32 %v432_v55, 7 }
  0x22   :  { %287 = vmatprep.subr.bf16.mxu1 %v2497_v11  ;;  %v430_v58 = vld [vmem:[%s3918_s3] sm:$0x3] }
  0x23   :  { %v434_v57 = vsub.s32 0, %v2955_v56  ;;  %v3926_v59 = vsub.s32 1, %v2955_v56 }
  0x25   :  { %288 = vmatpush1.bf16.msra.mxu1 %v2499_v12  ;;  %v2964_v60 = vrot.slane %v430_v58, %v434_v57  ;;  %v2968_v62 = vrot.slane %v430_v58, %v3926_v59 }
  0xd9   :  { %v2444_v14 = vpop.f32.mrb[0].mxu0 }
  0xda   :  { %v165_v16 = vpop.f32.mrb[1].mxu0  ;;  %v2901_v27 = vadd.f32 %v2444_v14, %v2171_v15 }
  0xdb   :  { %v2445_v17 = vpop.f32.mrb[2].mxu0  ;;  %v2891_v19 = vadd.f32 %v2171_v15, %v165_v16 }
  0xdc   :  { %v168_v18 = vpop.f32.mrb[3].mxu0  ;;  %v2899_v24 = vadd.f32 %v2445_v17, %v2171_v15 }
  0xdd   :  { %v2893_v20 = vadd.f32 %v2171_v15, %v168_v18 }
  0xde   :  { %v229_v28 = vpack.c.bf16 %v2899_v24, %v2901_v27 }
  0xdf   :  { %v228_v21 = vpack.c.bf16 %v2893_v20, %v2891_v19 }
  0xe1   :  { %2193 = vmatmul.mubr.msk.bf16.vlgmr.msra.gmra.mrb[0].mxu1 %vm260_vm1, %v228_v21  ;;  %v2448_v22 = vpop.f32.mrb[4].mxu0 }
  0xe2   :  { %327 = vmatprep.mubr.bf16.mxu1 %v2780_v13  ;;  %v181_v23 = vpop.f32.mrb[5].mxu0  ;;  %v2915_v38 = vadd.f32 %v2448_v22, %v2171_v15 }
  0xe3   :  { %v2449_v25 = vpop.f32.mrb[6].mxu0  ;;  %v2905_v29 = vadd.f32 %v2171_v15, %v181_v23 }
  0xe4   :  { %v184_v26 = vpop.f32.mrb[7].mxu0  ;;  %v2917_v39 = vadd.f32 %v2449_v25, %v2171_v15 }
  0xe5   :  { %v2908_v30 = vadd.f32 %v2171_v15, %v184_v26 }
  0xe6   :  { %v231_v42 = vpack.c.bf16 %v2917_v39, %v2915_v38 }
  0xe7   :  { %v230_v35 = vpack.c.bf16 %v2908_v30, %v2905_v29 }
  0xe9   :  { %2194 = vmatmul.mubr.msk.bf16.gmra.mrb[4].mxu1 %vm260_vm1, %v229_v28  ;;  %v2452_v31 = vpop.f32.mrb[8].mxu0 }
  0xea   :  { %337 = vmatprep.mubr.bf16.mxu1 %v2780_v13  ;;  %v197_v32 = vpop.f32.mrb[9].mxu0  ;;  %v2931_v46 = vadd.f32 %v2452_v31, %v2171_v15 }
  0xeb   :  { %v2453_v33 = vpop.f32.mrb[10].mxu0  ;;  %v2921_v43 = vadd.f32 %v2171_v15, %v197_v32 }
  0xec   :  { %v200_v34 = vpop.f32.mrb[11].mxu0  ;;  %3941 = vst [vmem:[#allocation9_spill] sm:$0xff] %v2931_v46  ;;  %v2933_v47 = vadd.f32 %v2453_v33, %v2171_v15 }
  0xed   :  { %v2924_v44 = vadd.f32 %v2171_v15, %v200_v34 }
  0xee   :  { %3942 = vst [vmem:[#allocation10_spill] sm:$0xff] %v2933_v47  ;;  %v233_v48 = vpack.c.bf16 %v2933_v47, %v2931_v46 }
  0xef   :  { %3940 = vst [vmem:[#allocation8_spill] sm:$0xff] %v2924_v44  ;;  %v232_v45 = vpack.c.bf16 %v2924_v44, %v2921_v43 }
  0xf1   :  { %2195 = vmatmul.mubr.msk.bf16.gmra.mrb[8].mxu1 %vm260_vm1, %v230_v35  ;;  %v2456_v36 = vpop.f32.mrb[12].mxu0 }
  0xf2   :  { %347 = vmatprep.mubr.bf16.mxu1 %v2780_v13  ;;  %v213_v37 = vpop.f32.mrb[13].mxu0  ;;  %v2947_v52 = vadd.f32 %v2456_v36, %v2171_v15 }
  0xf3   :  { %v2457_v40 = vpop.f32.mrb[14].mxu0  ;;  %v2937_v49 = vadd.f32 %v2171_v15, %v213_v37 }
  0xf4   :  { %v216_v41 = vpop.f32.mrb[15].mxu0  ;;  %3945 = vst [vmem:[#allocation13_spill] sm:$0xff] %v2947_v52  ;;  %v2949_v53 = vadd.f32 %v2457_v40, %v2171_v15 }
  0xf5   :  { %3943 = vst [vmem:[#allocation11_spill] sm:$0xff] %v2937_v49  ;;  %v2940_v50 = vadd.f32 %v2171_v15, %v216_v41 }
  0xf6   :  { %3946 = vst [vmem:[#allocation14_spill] sm:$0xff] %v2949_v53  ;;  %v235_v54 = vpack.c.bf16 %v2949_v53, %v2947_v52 }
  0xf7   :  { %3944 = vst [vmem:[#allocation12_spill] sm:$0xff] %v2940_v50  ;;  %v234_v51 = vpack.c.bf16 %v2940_v50, %v2937_v49 }
  0xf9   :  { %2196 = vmatmul.mubr.msk.bf16.gmra.mrb[12].mxu1 %vm260_vm1, %v231_v42 }
  0xfa   :  { %357 = vmatprep.mubr.bf16.mxu1 %v2780_v13 }
 0x101   :  { %2197 = vmatmul.mubr.msk.bf16.gmra.mrb[16].mxu1 %vm260_vm1, %v232_v45 }
 0x102   :  { %367 = vmatprep.mubr.bf16.mxu1 %v2780_v13 }
 0x109   :  { %2198 = vmatmul.mubr.msk.bf16.gmra.mrb[20].mxu1 %vm260_vm1, %v233_v48 }
 0x10a   :  { %377 = vmatprep.mubr.bf16.mxu1 %v2780_v13 }
 0x111   :  { %2199 = vmatmul.mubr.msk.bf16.gmra.mrb[24].mxu1 %vm260_vm1, %v234_v51 }
 0x112   :  { %387 = vmatprep.mubr.bf16.mxu1 %v2780_v13 }
 0x119   :  { %2200 = vmatmul.mubr.msk.bf16.gmra.mrb[28].mxu1 %vm260_vm1, %v235_v54 }
 0x11a   :  { %1108 = vmatprep.mubr.bf16.mxu1 %v2780_v13 }
 0x1b4   :  { %v319_v61 = vpop.f32.mrb[0].mxu1 }
 0x1b5   :  { %v398_v63 = vmul.f32 2.0, %v319_v61  ;;  %v321_v0 = vpop.f32.mrb[1].mxu1 }
 0x1b6   :  { %v399_v1 = vmul.f32 2.0, %v321_v0  ;;  %v323_v2 = vpop.f32.mrb[2].mxu1 }
 0x1b7   :  { %v400_v3 = vmul.f32 2.0, %v323_v2  ;;  %v325_v4 = vpop.f32.mrb[3].mxu1  ;;  %v2971_v5 = vsub.f32 %v398_v63, %v2964_v60 }
 0x1b8   :  { %v401_v6 = vmul.f32 2.0, %v325_v4  ;;  %v2974_v7 = vsub.f32 %v399_v1, %v2968_v62 }
 0x1b9   :  { %v2977_v8 = vsub.f32 %v400_v3, %v2964_v60 }
 0x1ba   :  { %v2980_v9 = vsub.f32 %v401_v6, %v2968_v62  ;;  %v474_v10 = vmax.f32 %v2971_v5, %v2974_v7 }
 0x1bc   :  { %475 = vmax.xlane.f32.xlu0 %v474_v10  ;;  %v329_v11 = vpop.f32.mrb[4].mxu1  ;;  %v477_v17 = vmax.f32 %v2977_v8, %v2980_v9 }
 0x1bd   :  { %v402_v12 = vmul.f32 2.0, %v329_v11  ;;  %v331_v14 = vpop.f32.mrb[5].mxu1 }
 0x1be   :  { %v403_v15 = vmul.f32 2.0, %v331_v14  ;;  %v333_v16 = vpop.f32.mrb[6].mxu1 }
 0x1bf   :  { %v404_v18 = vmul.f32 2.0, %v333_v16  ;;  %v335_v21 = vpop.f32.mrb[7].mxu1  ;;  %v2987_v22 = vsub.f32 %v402_v12, %v2964_v60 }
 0x1c0   :  { %v405_v23 = vmul.f32 2.0, %v335_v21  ;;  %478 = vmax.xlane.f32.xlu0 %v477_v17  ;;  %v2990_v25 = vsub.f32 %v403_v15, %v2968_v62 }
 0x1c1   :  { %v2993_v26 = vsub.f32 %v404_v18, %v2964_v60 }
 0x1c2   :  { %v2996_v28 = vsub.f32 %v405_v23, %v2968_v62  ;;  %v480_v31 = vmax.f32 %v2987_v22, %v2990_v25 }
 0x1c4   :  { %481 = vmax.xlane.f32.xlu1 %v480_v31  ;;  %v339_v32 = vpop.f32.mrb[8].mxu1  ;;  %v483_v37 = vmax.f32 %v2993_v26, %v2996_v28 }
 0x1c5   :  { %v406_v33 = vmul.f32 2.0, %v339_v32  ;;  %v341_v34 = vpop.f32.mrb[9].mxu1 }
 0x1c6   :  { %v407_v35 = vmul.f32 2.0, %v341_v34  ;;  %v343_v36 = vpop.f32.mrb[10].mxu1 }
 0x1c7   :  { %v3003_v40 = vsub.f32 %v406_v33, %v2964_v60  ;;  %v408_v41 = vmul.f32 2.0, %v343_v36  ;;  %v345_v42 = vpop.f32.mrb[11].mxu1 }
 0x1c8   :  { %v3006_v45 = vsub.f32 %v407_v35, %v2968_v62  ;;  %v409_v48 = vmul.f32 2.0, %v345_v42  ;;  %484 = vmax.xlane.f32.xlu1 %v483_v37 }
 0x1c9   :  { %v3009_v51 = vsub.f32 %v408_v41, %v2964_v60 }
 0x1ca   :  { %v3012_v54 = vsub.f32 %v409_v48, %v2968_v62  ;;  %v486_v55 = vmax.f32 %v3003_v40, %v3006_v45 }
 0x1cc   :  { %487 = vmax.xlane.f32.xlu0 %v486_v55  ;;  %v349_v58 = vpop.f32.mrb[12].mxu1  ;;  %v489_v61 = vmax.f32 %v3009_v51, %v3012_v54 }
 0x1cd   :  { %v410_v63 = vmul.f32 2.0, %v349_v58  ;;  %v351_v0 = vpop.f32.mrb[13].mxu1 }
 0x1ce   :  { %v411_v1 = vmul.f32 2.0, %v351_v0  ;;  %490 = vmax.xlane.f32.xlu1 %v489_v61  ;;  %v353_v2 = vpop.f32.mrb[14].mxu1 }
 0x1cf   :  { %v3019_v3 = vsub.f32 %v410_v63, %v2964_v60  ;;  %v412_v4 = vmul.f32 2.0, %v353_v2  ;;  %v355_v6 = vpop.f32.mrb[15].mxu1 }
 0x1d0   :  { %v3022_v10 = vsub.f32 %v411_v1, %v2968_v62  ;;  %v413_v11 = vmul.f32 2.0, %v355_v6 }
 0x1d1   :  { %v3025_v12 = vsub.f32 %v412_v4, %v2964_v60 }
 0x1d2   :  { %v3028_v14 = vsub.f32 %v413_v11, %v2968_v62  ;;  %v492_v15 = vmax.f32 %v3019_v3, %v3022_v10 }
 0x1d4   :  { %493 = vmax.xlane.f32.xlu0 %v492_v15  ;;  %v359_v16 = vpop.f32.mrb[16].mxu1  ;;  %v495_v17 = vmax.f32 %v3025_v12, %v3028_v14 }
 0x1d5   :  { %v414_v18 = vmul.f32 2.0, %v359_v16  ;;  %v361_v21 = vpop.f32.mrb[17].mxu1 }
 0x1d6   :  { %v415_v23 = vmul.f32 2.0, %v361_v21  ;;  %496 = vmax.xlane.f32.xlu1 %v495_v17  ;;  %v363_v31 = vpop.f32.mrb[18].mxu1 }
 0x1d7   :  { %v3035_v32 = vsub.f32 %v414_v18, %v2964_v60  ;;  %v416_v33 = vmul.f32 2.0, %v363_v31  ;;  %v365_v34 = vpop.f32.mrb[19].mxu1 }
 0x1d8   :  { %v3038_v35 = vsub.f32 %v415_v23, %v2968_v62  ;;  %v417_v36 = vmul.f32 2.0, %v365_v34 }
 0x1d9   :  { %v3041_v37 = vsub.f32 %v416_v33, %v2964_v60 }
 0x1da   :  { %v3044_v41 = vsub.f32 %v417_v36, %v2968_v62  ;;  %v498_v42 = vmax.f32 %v3035_v32, %v3038_v35 }
 0x1dc   :  { %499 = vmax.xlane.f32.xlu0 %v498_v42  ;;  %v369_v48 = vpop.f32.mrb[20].mxu1  ;;  %v501_v55 = vmax.f32 %v3041_v37, %v3044_v41 }
 0x1dd   :  { %v418_v58 = vmul.f32 2.0, %v369_v48  ;;  %v371_v61 = vpop.f32.mrb[21].mxu1 }
 0x1de   :  { %v419_v63 = vmul.f32 2.0, %v371_v61  ;;  %502 = vmax.xlane.f32.xlu1 %v501_v55  ;;  %v373_v0 = vpop.f32.mrb[22].mxu1 }
 0x1df   :  { %v3051_v1 = vsub.f32 %v418_v58, %v2964_v60  ;;  %v420_v2 = vmul.f32 2.0, %v373_v0  ;;  %v375_v4 = vpop.f32.mrb[23].mxu1 }
 0x1e0   :  { %v3054_v6 = vsub.f32 %v419_v63, %v2968_v62  ;;  %v421_v11 = vmul.f32 2.0, %v375_v4 }
 0x1e1   :  { %v3057_v15 = vsub.f32 %v420_v2, %v2964_v60 }
 0x1e2   :  { %v3060_v16 = vsub.f32 %v421_v11, %v2968_v62  ;;  %v504_v17 = vmax.f32 %v3051_v1, %v3054_v6 }
 0x1e4   :  { %505 = vmax.xlane.f32.xlu0 %v504_v17  ;;  %v379_v18 = vpop.f32.mrb[24].mxu1  ;;  %v507_v21 = vmax.f32 %v3057_v15, %v3060_v16 }
 0x1e5   :  { %v422_v23 = vmul.f32 2.0, %v379_v18  ;;  %v381_v31 = vpop.f32.mrb[25].mxu1 }
 0x1e6   :  { %v423_v33 = vmul.f32 2.0, %v381_v31  ;;  %508 = vmax.xlane.f32.xlu1 %v507_v21  ;;  %v383_v34 = vpop.f32.mrb[26].mxu1 }
 0x1e7   :  { %v3067_v36 = vsub.f32 %v422_v23, %v2964_v60  ;;  %v424_v42 = vmul.f32 2.0, %v383_v34  ;;  %v385_v48 = vpop.f32.mrb[27].mxu1 }
 0x1e8   :  { %v3070_v55 = vsub.f32 %v423_v33, %v2968_v62  ;;  %v425_v58 = vmul.f32 2.0, %v385_v48 }
 0x1e9   :  { %v3073_v61 = vsub.f32 %v424_v42, %v2964_v60 }
 0x1ea   :  { %v3076_v63 = vsub.f32 %v425_v58, %v2968_v62  ;;  %v510_v0 = vmax.f32 %v3067_v36, %v3070_v55 }
 0x1ec   :  { %511 = vmax.xlane.f32.xlu0 %v510_v0  ;;  %v389_v2 = vpop.f32.mrb[28].mxu1  ;;  %v513_v4 = vmax.f32 %v3073_v61, %v3076_v63 }
 0x1ed   :  { %v426_v11 = vmul.f32 2.0, %v389_v2  ;;  %v391_v17 = vpop.f32.mrb[29].mxu1 }
 0x1ee   :  { %v427_v18 = vmul.f32 2.0, %v391_v17  ;;  %514 = vmax.xlane.f32.xlu1 %v513_v4  ;;  %v393_v21 = vpop.f32.mrb[30].mxu1  ;;  %v2500_v4 = vld [vmem:[%s3919_s4 + $0x40] sm:$0xff]   ;;  %v2504_v17 = vld [vmem:[%s3919_s4 + $0x50] sm:$0xff]  }
 0x1ef   :  { %v3083_v23 = vsub.f32 %v426_v11, %v2964_v60  ;;  %v428_v31 = vmul.f32 2.0, %v393_v21  ;;  %v395_v33 = vpop.f32.mrb[31].mxu1  ;;  %2302 = vmatprep.subr.bf16.mxu0 %v2500_v4  ;;  %v2503_v11 = vld [vmem:[%s3919_s4 + $0x8] sm:$0xff]   ;;  %v2506_v21 = vld [vmem:[%s3919_s4 + $0x58] sm:$0xff]  }
 0x1f0   :  { %v3086_v34 = vsub.f32 %v427_v18, %v2968_v62  ;;  %v429_v42 = vmul.f32 2.0, %v395_v33  ;;  %v2505_v18 = vld [vmem:[%s3919_s4 + $0x10] sm:$0xff]  }
 0x1f1   :  { %v3089_v48 = vsub.f32 %v428_v31, %v2964_v60  ;;  %v2501_v60 = vld [vmem:[%s3919_s4] sm:$0xff]  }
 0x1f2   :  { %v3092_v58 = vsub.f32 %v429_v42, %v2968_v62  ;;  %v516_v0 = vmax.f32 %v3083_v23, %v3086_v34  ;;  %v2502_v62 = vld [vmem:[%s3919_s4 + $0x48] sm:$0xff]   ;;  %2303 = vmatpush3.bf16.msra.mxu0 %v2501_v60 }
 0x1f3   :  { %2304 = vmatprep.subr.bf16.mxu0 %v2502_v62 }
 0x1f4   :  { %517 = vmax.xlane.f32.xlu0 %v516_v0  ;;  %v519_v2 = vmax.f32 %v3089_v48, %v3092_v58 }
 0x1f6   :  { %520 = vmax.xlane.f32.xlu1 %v519_v2  ;;  %2305 = vmatpush3.bf16.msra.mxu0 %v2503_v11 }
 0x1f7   :  { %2306 = vmatprep.subr.bf16.mxu0 %v2504_v17 }
 0x1fa   :  { %2307 = vmatpush3.bf16.msra.mxu0 %v2505_v18 }
 0x1fb   :  { %2308 = vmatprep.subr.bf16.mxu0 %v2506_v21 }
 0x249   :  { %v476_v31 = vpop.xlane.xlu0 %475 }
 0x24a   :  { %v522_v33 = vsub.f32 %v2971_v5, %v476_v31  ;;  %v523_v42 = vsub.f32 %v2974_v7, %v476_v31 }
 0x24c   :  { %v554_v0 = vmul.f32 1.442695, %v522_v33  ;;  %v556_v2 = vmul.f32 1.442695, %v523_v42 }
 0x24d   :  { %v479_v4 = vpop.xlane.xlu0 %478 }
 0x24e   :  { %2540 = vpow2.f32 %v554_v0  ;;  %v524_v60 = vsub.f32 %v2977_v8, %v479_v4  ;;  %v525_v62 = vsub.f32 %v2980_v9, %v479_v4 }
 0x24f   :  { %2542 = vpow2.f32 %v556_v2 }
 0x250   :  { %v558_v11 = vmul.f32 1.442695, %v524_v60  ;;  %v560_v17 = vmul.f32 1.442695, %v525_v62 }
 0x251   :  { %v482_v59 = vpop.xlane.xlu1 %481 }
 0x252   :  { %2544 = vpow2.f32 %v558_v11  ;;  %v526_v18 = vsub.f32 %v2987_v22, %v482_v59  ;;  %v527_v21 = vsub.f32 %v2990_v25, %v482_v59 }
 0x253   :  { %2546 = vpow2.f32 %v560_v17 }
 0x254   :  { %v562_v5 = vmul.f32 1.442695, %v526_v18  ;;  %v564_v7 = vmul.f32 1.442695, %v527_v21 }
 0x255   :  { %v485_v31 = vpop.xlane.xlu1 %484 }
 0x256   :  { %2548 = vpow2.f32 %v562_v5  ;;  %v528_v33 = vsub.f32 %v2993_v26, %v485_v31  ;;  %v529_v8 = vsub.f32 %v2996_v28, %v485_v31 }
 0x257   :  { %2550 = vpow2.f32 %v564_v7 }
 0x258   :  { %v3127_v9 = vpop.eup %2540  ;;  %v566_v42 = vmul.f32 1.442695, %v528_v33  ;;  %v568_v0 = vmul.f32 1.442695, %v529_v8 }
 0x259   :  { %v3129_v2 = vpop.eup %2542  ;;  %v488_v4 = vpop.xlane.xlu0 %487 }
 0x25a   :  { %2552 = vpow2.f32 %v566_v42  ;;  %v530_v59 = vsub.f32 %v3003_v40, %v488_v4  ;;  %v531_v22 = vsub.f32 %v3006_v45, %v488_v4  ;;  %v618_v25 = vadd.f32 %v3129_v2, %v3127_v9 }
 0x25b   :  { %2554 = vpow2.f32 %v568_v0  ;;  %v491_v26 = vpop.xlane.xlu1 %490 }
 0x25c   :  { %v3135_v60 = vpop.eup %2544  ;;  %v570_v28 = vmul.f32 1.442695, %v530_v59  ;;  %v572_v62 = vmul.f32 1.442695, %v531_v22  ;;  %v532_v11 = vsub.f32 %v3009_v51, %v491_v26  ;;  %v533_v17 = vsub.f32 %v3012_v54, %v491_v26  ;;  %619 = vadd.xlane.f32.xlu0 %v618_v25 }
 0x25d   :  { %v3139_v18 = vpop.eup %2546 }
 0x25e   :  { %2556 = vpow2.f32 %v570_v28  ;;  %v574_v40 = vmul.f32 1.442695, %v532_v11  ;;  %v576_v21 = vmul.f32 1.442695, %v533_v17  ;;  %v621_v45 = vadd.f32 %v3139_v18, %v3135_v60 }
 0x25f   :  { %2558 = vpow2.f32 %v572_v62 }
 0x260   :  { %v3143_v5 = vpop.eup %2548  ;;  %2560 = vpow2.f32 %v574_v40  ;;  %622 = vadd.xlane.f32.xlu1 %v621_v45 }
 0x261   :  { %v3145_v7 = vpop.eup %2550  ;;  %2562 = vpow2.f32 %v576_v21  ;;  %v494_v51 = vpop.xlane.xlu0 %493  ;;  %v2507_v21 = vld [vmem:[%s3919_s4 + $0x18] sm:$0xff]  }
 0x262   :  { %v534_v54 = vsub.f32 %v3019_v3, %v494_v51  ;;  %v535_v31 = vsub.f32 %v3022_v10, %v494_v51  ;;  %v624_v33 = vadd.f32 %v3145_v7, %v3143_v5  ;;  %2309 = vmatpush3.bf16.msra.mxu0 %v2507_v21 }
 0x263   :  { %v497_v8 = vpop.xlane.xlu1 %496 }
 0x264   :  { %v3151_v42 = vpop.eup %2552  ;;  %v578_v0 = vmul.f32 1.442695, %v534_v54  ;;  %v580_v4 = vmul.f32 1.442695, %v535_v31  ;;  %v536_v59 = vsub.f32 %v3025_v12, %v497_v8  ;;  %v537_v22 = vsub.f32 %v3028_v14, %v497_v8  ;;  %625 = vadd.xlane.f32.xlu0 %v624_v33 }
 0x265   :  { %v3155_v25 = vpop.eup %2554 }
 0x266   :  { %2564 = vpow2.f32 %v578_v0  ;;  %v582_v26 = vmul.f32 1.442695, %v536_v59  ;;  %v584_v3 = vmul.f32 1.442695, %v537_v22  ;;  %v627_v10 = vadd.f32 %v3155_v25, %v3151_v42  ;;  %v2509_v59 = vld [vmem:[%s3919_s4 + $0x20] sm:$0xff]  }
 0x267   :  { %2566 = vpow2.f32 %v580_v4 }
 0x268   :  { %v3159_v28 = vpop.eup %2556  ;;  %2568 = vpow2.f32 %v582_v26  ;;  %628 = vadd.xlane.f32.xlu1 %v627_v10  ;;  %v2510_v26 = vld [vmem:[%s3919_s4 + $0x68] sm:$0xff]  }
 0x269   :  { %v3161_v62 = vpop.eup %2558  ;;  %2570 = vpow2.f32 %v584_v3  ;;  %v500_v12 = vpop.xlane.xlu0 %499 }
 0x26a   :  { %v3163_v11 = vpop.eup %2560  ;;  %v538_v14 = vsub.f32 %v3035_v32, %v500_v12  ;;  %v539_v17 = vsub.f32 %v3038_v35, %v500_v12  ;;  %v630_v40 = vadd.f32 %v3161_v62, %v3159_v28  ;;  %v2508_v35 = vld [vmem:[%s3919_s4 + $0x60] sm:$0xff]  }
 0x26b   :  { %v3172_v45 = vpop.eup %2562  ;;  %v503_v51 = vpop.xlane.xlu1 %502  ;;  %2310 = vmatprep.subr.bf16.mxu0 %v2508_v35  ;;  %v2513_v35 = vld [vmem:[%s3919_s4 + $0x30] sm:$0xff]  }
 0x26c   :  { %v586_v54 = vmul.f32 1.442695, %v538_v14  ;;  %v588_v31 = vmul.f32 1.442695, %v539_v17  ;;  %v540_v33 = vsub.f32 %v3041_v37, %v503_v51  ;;  %v541_v8 = vsub.f32 %v3044_v41, %v503_v51  ;;  %631 = vadd.xlane.f32.xlu0 %v630_v40  ;;  %2311 = vmatpush3.bf16.msra.mxu0 %v2509_v59  ;;  %v2511_v17 = vld [vmem:[%s3919_s4 + $0x28] sm:$0xff]  }
 0x26d   :  { %v633_v32 = vadd.f32 %v3172_v45, %v3163_v11  ;;  %2312 = vmatprep.subr.bf16.mxu0 %v2510_v26 }
 0x26e   :  { %2572 = vpow2.f32 %v586_v54  ;;  %v590_v0 = vmul.f32 1.442695, %v540_v33  ;;  %v592_v4 = vmul.f32 1.442695, %v541_v8 }
 0x26f   :  { %2574 = vpow2.f32 %v588_v31  ;;  %634 = vadd.xlane.f32.xlu1 %v633_v32 }
 0x270   :  { %v3184_v37 = vpop.eup %2564  ;;  %2576 = vpow2.f32 %v590_v0  ;;  %2313 = vmatpush3.bf16.msra.mxu0 %v2511_v17 }
 0x271   :  { %v3186_v41 = vpop.eup %2566  ;;  %2578 = vpow2.f32 %v592_v4  ;;  %v506_v22 = vpop.xlane.xlu0 %505  ;;  %v2514_v4 = vld [vmem:[%s3919_s4 + $0x78] sm:$0xff]  }
 0x272   :  { %v3191_v3 = vpop.eup %2568  ;;  %v542_v10 = vsub.f32 %v3051_v1, %v506_v22  ;;  %v543_v12 = vsub.f32 %v3054_v6, %v506_v22  ;;  %v636_v14 = vadd.f32 %v3186_v41, %v3184_v37  ;;  %v2512_v6 = vld [vmem:[%s3919_s4 + $0x70] sm:$0xff]  }
 0x273   :  { %v3200_v40 = vpop.eup %2570  ;;  %v509_v21 = vpop.xlane.xlu1 %508  ;;  %2314 = vmatprep.subr.bf16.mxu0 %v2512_v6 }
 0x274   :  { %v594_v51 = vmul.f32 1.442695, %v542_v10  ;;  %v596_v54 = vmul.f32 1.442695, %v543_v12  ;;  %v544_v31 = vsub.f32 %v3057_v15, %v509_v21  ;;  %v545_v33 = vsub.f32 %v3060_v16, %v509_v21  ;;  %637 = vadd.xlane.f32.xlu0 %v636_v14  ;;  %2315 = vmatpush3.bf16.msra.mxu0 %v2513_v35  ;;  %v2515_v12 = vld [vmem:[%s3919_s4 + $0x38] sm:$0xff]  }
 0x275   :  { %v639_v1 = vadd.f32 %v3200_v40, %v3191_v3  ;;  %2316 = vmatprep.subr.bf16.mxu0 %v2514_v4 }
 0x276   :  { %2580 = vpow2.f32 %v594_v51  ;;  %v598_v8 = vmul.f32 1.442695, %v544_v31  ;;  %v600_v32 = vmul.f32 1.442695, %v545_v33 }
 0x277   :  { %2582 = vpow2.f32 %v596_v54  ;;  %640 = vadd.xlane.f32.xlu1 %v639_v1 }
 0x278   :  { %v3212_v15 = vpop.eup %2572  ;;  %2584 = vpow2.f32 %v598_v8  ;;  %2317 = vmatpush3.bf16.msra.mxu0 %v2515_v12 }
 0x279   :  { %v3214_v16 = vpop.eup %2574  ;;  %2586 = vpow2.f32 %v600_v32  ;;  %v512_v0 = vpop.xlane.xlu0 %511 }
 0x27a   :  { %v3219_v59 = vpop.eup %2576  ;;  %v546_v22 = vsub.f32 %v3067_v36, %v512_v0  ;;  %v547_v26 = vsub.f32 %v3070_v55, %v512_v0  ;;  %v642_v10 = vadd.f32 %v3214_v16, %v3212_v15 }
 0x27b   :  { %v3228_v14 = vpop.eup %2578  ;;  %v515_v17 = vpop.xlane.xlu1 %514 }
 0x27c   :  { %v602_v21 = vmul.f32 1.442695, %v546_v22  ;;  %v604_v51 = vmul.f32 1.442695, %v547_v26  ;;  %v548_v54 = vsub.f32 %v3073_v61, %v515_v17  ;;  %v549_v31 = vsub.f32 %v3076_v63, %v515_v17  ;;  %643 = vadd.xlane.f32.xlu0 %v642_v10 }
 0x27d   :  { %v645_v36 = vadd.f32 %v3228_v14, %v3219_v59 }
 0x27e   :  { %2588 = vpow2.f32 %v602_v21  ;;  %v606_v55 = vmul.f32 1.442695, %v548_v54  ;;  %v608_v33 = vmul.f32 1.442695, %v549_v31 }
 0x27f   :  { %2590 = vpow2.f32 %v604_v51  ;;  %646 = vadd.xlane.f32.xlu1 %v645_v36 }
 0x280   :  { %v3234_v1 = vpop.eup %2580  ;;  %2592 = vpow2.f32 %v606_v55 }
 0x281   :  { %v3236_v6 = vpop.eup %2582  ;;  %2594 = vpow2.f32 %v608_v33  ;;  %v518_v8 = vpop.xlane.xlu0 %517 }
 0x282   :  { %v3238_v61 = vpop.eup %2584  ;;  %v550_v63 = vsub.f32 %v3083_v23, %v518_v8  ;;  %v551_v32 = vsub.f32 %v3086_v34, %v518_v8  ;;  %v648_v35 = vadd.f32 %v3236_v6, %v3234_v1 }
 0x283   :  { %v3244_v0 = vpop.eup %2586  ;;  %v521_v4 = vpop.xlane.xlu1 %520 }
 0x284   :  { %v610_v22 = vmul.f32 1.442695, %v550_v63  ;;  %v612_v26 = vmul.f32 1.442695, %v551_v32  ;;  %649 = vadd.xlane.f32.xlu0 %v648_v35  ;;  %v552_v10 = vsub.f32 %v3089_v48, %v521_v4  ;;  %v553_v12 = vsub.f32 %v3092_v58, %v521_v4  ;;  %v2516_v35 = vld [vmem:[%s3920_s5 + $0x20] ss:$8 sps:$4 sm:$0xff]  }
 0x285   :  { %v651_v17 = vadd.f32 %v3244_v0, %v3238_v61  ;;  %v2518_v4 = vld [vmem:[%s3920_s5 + $0x24] ss:$8 sps:$4 sm:$0xff]  }
 0x286   :  { %2596 = vpow2.f32 %v610_v22  ;;  %v614_v23 = vmul.f32 1.442695, %v552_v10  ;;  %v616_v21 = vmul.f32 1.442695, %v553_v12  ;;  %v2521_v22 = vld [vmem:[%s3920_s5 + $0x34] ss:$8 sps:$4 sm:$0xff]   ;;  %1076 = vmatprep.subr.bf16.mxu1 %v2518_v4 }
 0x287   :  { %2598 = vpow2.f32 %v612_v26  ;;  %652 = vadd.xlane.f32.xlu1 %v651_v17  ;;  %1077 = vmatpush1.bf16.msra.mxu1 %v2516_v35  ;;  %v2519_v26 = vld [vmem:[%s3920_s5 + $0x30] ss:$8 sps:$4 sm:$0xff]  }
 0x288   :  { %v3250_v34 = vpop.eup %2588  ;;  %2600 = vpow2.f32 %v614_v23  ;;  %1078 = vmatprep.subr.bf16.mxu1 %v2521_v22 }
 0x289   :  { %v3252_v51 = vpop.eup %2590  ;;  %2602 = vpow2.f32 %v616_v21 }
 0x28a   :  { %v3254_v54 = vpop.eup %2592  ;;  %v654_v48 = vadd.f32 %v3252_v51, %v3250_v34 }
 0x28b   :  { %v3258_v58 = vpop.eup %2594  ;;  %1079 = vmatpush1.bf16.msra.mxu1 %v2519_v26 }
 0x28c   :  { %655 = vadd.xlane.f32.xlu0 %v654_v48  ;;  %v657_v31 = vadd.f32 %v3258_v58, %v3254_v54 }
 0x28e   :  { %658 = vadd.xlane.f32.xlu1 %v657_v31 }
 0x290   :  { %v3262_v36 = vpop.eup %2596 }
 0x291   :  { %v3264_v55 = vpop.eup %2598 }
 0x292   :  { %v3266_v33 = vpop.eup %2600  ;;  %v660_v8 = vadd.f32 %v3264_v55, %v3262_v36 }
 0x293   :  { %v3270_v63 = vpop.eup %2602 }
 0x294   :  { %661 = vadd.xlane.f32.xlu0 %v660_v8  ;;  %v663_v32 = vadd.f32 %v3270_v63, %v3266_v33 }
 0x296   :  { %664 = vadd.xlane.f32.xlu1 %v663_v32 }
 0x2e9   :  { %v620_v10 = vpop.xlane.xlu0 %619 }
 0x2ea   :  { %2604 = vrcp.f32 %v620_v10 }
 0x2ed   :  { %v623_v12 = vpop.xlane.xlu1 %622 }
 0x2ee   :  { %2606 = vrcp.f32 %v623_v12 }
 0x2f1   :  { %v626_v17 = vpop.xlane.xlu0 %625 }
 0x2f2   :  { %2608 = vrcp.f32 %v626_v17 }
 0x2f4   :  { %v2605_v23 = vpop.eup %2604 }
 0x2f5   :  { %v667_v21 = vmul.f32 %v2605_v23, %v3127_v9  ;;  %v629_v48 = vpop.xlane.xlu1 %628  ;;  %v668_v31 = vmul.f32 %v2605_v23, %v3129_v2 }
 0x2f6   :  { %2610 = vrcp.f32 %v629_v48 }
 0x2f7   :  { %714 = vst [vmem:[#allocation2] sm:$0xff] %v667_v21  ;;  %715 = vst [vmem:[#allocation2 + $0x8] sm:$0xff] %v668_v31 }
 0x2f8   :  { %v2607_v8 = vpop.eup %2606 }
 0x2f9   :  { %v670_v32 = vmul.f32 %v2607_v8, %v3135_v60  ;;  %v632_v35 = vpop.xlane.xlu0 %631  ;;  %v671_v4 = vmul.f32 %v2607_v8, %v3139_v18 }
 0x2fa   :  { %2612 = vrcp.f32 %v632_v35 }
 0x2fb   :  { %716 = vst [vmem:[#allocation2 + $0x20] sm:$0xff] %v670_v32  ;;  %717 = vst [vmem:[#allocation2 + $0x28] sm:$0xff] %v671_v4  ;;  %v747_v22 = vpack.c.bf16 %v671_v4, %v668_v31  ;;  %v746_v26 = vpack.c.bf16 %v670_v32, %v667_v21 }
 0x2fc   :  { %v2609_v10 = vpop.eup %2608  ;;  %v635_v12 = vpop.xlane.xlu1 %634 }
 0x2fd   :  { %2614 = vrcp.f32 %v635_v12  ;;  %922 = vmatprep.mubr.bf16.mxu0 %v747_v22  ;;  %v674_v9 = vmul.f32 %v2609_v10, %v3145_v7  ;;  %v673_v2 = vmul.f32 %v2609_v10, %v3143_v5 }
 0x2fe   :  { %923 = vmatmul.mubr.bf16.vlgmr.msra.gmra.mrb[16].mxu0 %v746_v26 }
 0x2ff   :  { %719 = vst [vmem:[#allocation2 + $0x48] sm:$0xff] %v674_v9  ;;  %718 = vst [vmem:[#allocation2 + $0x40] sm:$0xff] %v673_v2 }
 0x300   :  { %v2611_v60 = vpop.eup %2610 }
 0x301   :  { %v638_v17 = vpop.xlane.xlu0 %637  ;;  %v677_v18 = vmul.f32 %v2611_v60, %v3155_v25  ;;  %v676_v23 = vmul.f32 %v2611_v60, %v3151_v42 }
 0x302   :  { %2616 = vrcp.f32 %v638_v17 }
 0x303   :  { %721 = vst [vmem:[#allocation2 + $0x68] sm:$0xff] %v677_v18  ;;  %v749_v21 = vpack.c.bf16 %v677_v18, %v674_v9  ;;  %720 = vst [vmem:[#allocation2 + $0x60] sm:$0xff] %v676_v23  ;;  %v748_v48 = vpack.c.bf16 %v676_v23, %v673_v2 }
 0x304   :  { %v2613_v31 = vpop.eup %2612  ;;  %v641_v8 = vpop.xlane.xlu1 %640 }
 0x305   :  { %2618 = vrcp.f32 %v641_v8  ;;  %930 = vmatprep.mubr.bf16.mxu0 %v749_v21  ;;  %v680_v5 = vmul.f32 %v2613_v31, %v3161_v62  ;;  %v679_v7 = vmul.f32 %v2613_v31, %v3159_v28 }
 0x306   :  { %931 = vmatmul.mubr.bf16.gmra.mrb[20].mxu0 %v748_v48 }
 0x307   :  { %v2615_v32 = vpop.eup %2614  ;;  %723 = vst [vmem:[#allocation2 + $0x88] sm:$0xff] %v680_v5  ;;  %722 = vst [vmem:[#allocation2 + $0x80] sm:$0xff] %v679_v7 }
 0x308   :  { %v683_v25 = vmul.f32 %v2615_v32, %v3172_v45  ;;  %v682_v42 = vmul.f32 %v2615_v32, %v3163_v11 }
 0x309   :  { %v644_v35 = vpop.xlane.xlu0 %643 }
 0x30a   :  { %2620 = vrcp.f32 %v644_v35  ;;  %725 = vst [vmem:[#allocation2 + $0xa8] sm:$0xff] %v683_v25  ;;  %v751_v4 = vpack.c.bf16 %v683_v25, %v680_v5  ;;  %724 = vst [vmem:[#allocation2 + $0xa0] sm:$0xff] %v682_v42  ;;  %v750_v10 = vpack.c.bf16 %v682_v42, %v679_v7 }
 0x30c   :  { %v2617_v22 = vpop.eup %2616  ;;  %938 = vmatprep.mubr.bf16.mxu0 %v751_v4  ;;  %v647_v26 = vpop.xlane.xlu1 %646 }
 0x30d   :  { %2622 = vrcp.f32 %v647_v26  ;;  %v686_v28 = vmul.f32 %v2617_v22, %v3186_v41  ;;  %v685_v62 = vmul.f32 %v2617_v22, %v3184_v37 }
 0x30e   :  { %939 = vmatmul.mubr.bf16.gmra.mrb[24].mxu0 %v750_v10 }
 0x30f   :  { %v2619_v12 = vpop.eup %2618  ;;  %727 = vst [vmem:[#allocation2 + $0xc8] sm:$0xff] %v686_v28  ;;  %726 = vst [vmem:[#allocation2 + $0xc0] sm:$0xff] %v685_v62 }
 0x310   :  { %v689_v11 = vmul.f32 %v2619_v12, %v3200_v40  ;;  %v688_v45 = vmul.f32 %v2619_v12, %v3191_v3 }
 0x311   :  { %v650_v9 = vpop.xlane.xlu0 %649 }
 0x312   :  { %2624 = vrcp.f32 %v650_v9  ;;  %729 = vst [vmem:[#allocation2 + $0xe8] sm:$0xff] %v689_v11  ;;  %v753_v2 = vpack.c.bf16 %v689_v11, %v686_v28  ;;  %728 = vst [vmem:[#allocation2 + $0xe0] sm:$0xff] %v688_v45  ;;  %v752_v18 = vpack.c.bf16 %v688_v45, %v685_v62 }
 0x314   :  { %v2621_v60 = vpop.eup %2620  ;;  %946 = vmatprep.mubr.bf16.mxu0 %v753_v2  ;;  %v653_v17 = vpop.xlane.xlu1 %652 }
 0x315   :  { %2626 = vrcp.f32 %v653_v17  ;;  %v692_v37 = vmul.f32 %v2621_v60, %v3214_v16  ;;  %v691_v41 = vmul.f32 %v2621_v60, %v3212_v15 }
 0x316   :  { %947 = vmatmul.mubr.bf16.gmra.mrb[28].mxu0 %v752_v18 }
 0x317   :  { %v2623_v23 = vpop.eup %2622  ;;  %731 = vst [vmem:[#allocation2 + $0x108] sm:$0xff] %v692_v37  ;;  %730 = vst [vmem:[#allocation2 + $0x100] sm:$0xff] %v691_v41 }
 0x318   :  { %v695_v3 = vmul.f32 %v2623_v23, %v3228_v14  ;;  %v694_v40 = vmul.f32 %v2623_v23, %v3219_v59 }
 0x319   :  { %v656_v21 = vpop.xlane.xlu0 %655 }
 0x31a   :  { %2628 = vrcp.f32 %v656_v21  ;;  %733 = vst [vmem:[#allocation2 + $0x128] sm:$0xff] %v695_v3  ;;  %v755_v48 = vpack.c.bf16 %v695_v3, %v692_v37  ;;  %732 = vst [vmem:[#allocation2 + $0x120] sm:$0xff] %v694_v40  ;;  %v754_v16 = vpack.c.bf16 %v694_v40, %v691_v41 }
 0x31b   :  { %v659_v31 = vpop.xlane.xlu1 %658 }
 0x31c   :  { %v2625_v8 = vpop.eup %2624  ;;  %954 = vmatprep.mubr.bf16.mxu0 %v755_v48  ;;  %2630 = vrcp.f32 %v659_v31 }
 0x31d   :  { %v698_v15 = vmul.f32 %v2625_v8, %v3236_v6  ;;  %v697_v5 = vmul.f32 %v2625_v8, %v3234_v1 }
 0x31e   :  { %955 = vmatmul.mubr.bf16.gmra.mrb[32].mxu0 %v754_v16 }
 0x31f   :  { %v2627_v7 = vpop.eup %2626  ;;  %735 = vst [vmem:[#allocation2 + $0x148] sm:$0xff] %v698_v15  ;;  %734 = vst [vmem:[#allocation2 + $0x140] sm:$0xff] %v697_v5 }
 0x320   :  { %v701_v59 = vmul.f32 %v2627_v7, %v3244_v0  ;;  %v700_v14 = vmul.f32 %v2627_v7, %v3238_v61 }
 0x321   :  { %v662_v32 = vpop.xlane.xlu0 %661 }
 0x322   :  { %2632 = vrcp.f32 %v662_v32  ;;  %737 = vst [vmem:[#allocation2 + $0x168] sm:$0xff] %v701_v59  ;;  %v757_v25 = vpack.c.bf16 %v701_v59, %v698_v15  ;;  %736 = vst [vmem:[#allocation2 + $0x160] sm:$0xff] %v700_v14  ;;  %v756_v6 = vpack.c.bf16 %v700_v14, %v697_v5 }
 0x323   :  { %v665_v42 = vpop.xlane.xlu1 %664 }
 0x324   :  { %v2629_v35 = vpop.eup %2628  ;;  %962 = vmatprep.mubr.bf16.mxu0 %v757_v25  ;;  %2634 = vrcp.f32 %v665_v42 }
 0x325   :  { %v704_v1 = vmul.f32 %v2629_v35, %v3252_v51  ;;  %v703_v4 = vmul.f32 %v2629_v35, %v3250_v34 }
 0x326   :  { %v2631_v22 = vpop.eup %2630  ;;  %963 = vmatmul.mubr.bf16.gmra.mrb[36].mxu0 %v756_v6 }
 0x327   :  { %v707_v0 = vmul.f32 %v2631_v22, %v3258_v58  ;;  %739 = vst [vmem:[#allocation2 + $0x188] sm:$0xff] %v704_v1  ;;  %v706_v61 = vmul.f32 %v2631_v22, %v3254_v54  ;;  %738 = vst [vmem:[#allocation2 + $0x180] sm:$0xff] %v703_v4 }
 0x329   :  { %741 = vst [vmem:[#allocation2 + $0x1a8] sm:$0xff] %v707_v0  ;;  %v759_v26 = vpack.c.bf16 %v707_v0, %v704_v1  ;;  %740 = vst [vmem:[#allocation2 + $0x1a0] sm:$0xff] %v706_v61  ;;  %v758_v28 = vpack.c.bf16 %v706_v61, %v703_v4 }
 0x32b   :  { %970 = vmatprep.mubr.bf16.mxu0 %v759_v26 }
 0x32c   :  { %v2633_v10 = vpop.eup %2632 }
 0x32d   :  { %v710_v62 = vmul.f32 %v2633_v10, %v3264_v55  ;;  %v709_v51 = vmul.f32 %v2633_v10, %v3262_v36 }
 0x32e   :  { %v2635_v12 = vpop.eup %2634  ;;  %971 = vmatmul.mubr.bf16.gmra.mrb[40].mxu0 %v758_v28 }
 0x32f   :  { %v713_v34 = vmul.f32 %v2635_v12, %v3270_v63  ;;  %743 = vst [vmem:[#allocation2 + $0x1c8] sm:$0xff] %v710_v62  ;;  %v712_v58 = vmul.f32 %v2635_v12, %v3266_v33  ;;  %742 = vst [vmem:[#allocation2 + $0x1c0] sm:$0xff] %v709_v51 }
 0x331   :  { %745 = vst [vmem:[#allocation2 + $0x1e8] sm:$0xff] %v713_v34  ;;  %v761_v54 = vpack.c.bf16 %v713_v34, %v710_v62  ;;  %744 = vst [vmem:[#allocation2 + $0x1e0] sm:$0xff] %v712_v58  ;;  %v760_v11 = vpack.c.bf16 %v712_v58, %v709_v51 }
 0x333   :  { %978 = vmatprep.mubr.bf16.mxu0 %v761_v54 }
 0x336   :  { %979 = vmatmul.mubr.bf16.gmra.mrb[44].mxu0 %v760_v11 }
 0x3d1   :  { %v2318_v45 = vpop.f32.mrb[16].mxu0 }
 0x3d2   :  { %v2319_v9 = vpop.f32.mrb[17].mxu0 }
 0x3d3   :  { %v3318_v2 = vadd.f32 %v2319_v9, %v2318_v45  ;;  %v2321_v55 = vpop.f32.mrb[18].mxu0 }
 0x3d4   :  { %v2322_v36 = vpop.f32.mrb[19].mxu0 }
 0x3d5   :  { %v3320_v60 = vadd.f32 %v2322_v36, %v2321_v55  ;;  %v1003_v63 = vsub.f32 %v2891_v19, %v3318_v2 }
 0x3d7   :  { %v1004_v33 = vsub.f32 %v2893_v20, %v3320_v60 }
 0x3d9   :  { %v1019_v17 = vpack.c.bf16 %v1004_v33, %v1003_v63  ;;  %v2324_v18 = vpop.f32.mrb[20].mxu0 }
 0x3da   :  { %v2325_v37 = vpop.f32.mrb[21].mxu0 }
 0x3db   :  { %v3326_v41 = vadd.f32 %v2325_v37, %v2324_v18  ;;  %v2327_v23 = vpop.f32.mrb[22].mxu0  ;;  %2225 = vmatmul.mubr.msk.bf16.vlgmr.msra.gmra.mrb[32].mxu1 %vm260_vm1, %v1019_v17 }
 0x3dc   :  { %v2328_v3 = vpop.f32.mrb[23].mxu0  ;;  %1118 = vmatprep.mubr.bf16.mxu1 %v2780_v13 }
 0x3dd   :  { %v3330_v40 = vadd.f32 %v2328_v3, %v2327_v23  ;;  %v1005_v21 = vsub.f32 %v2901_v27, %v3326_v41 }
 0x3df   :  { %v1006_v48 = vsub.f32 %v2899_v24, %v3330_v40 }
 0x3e1   :  { %v1020_v31 = vpack.c.bf16 %v1006_v48, %v1005_v21  ;;  %v2330_v8 = vpop.f32.mrb[24].mxu0 }
 0x3e2   :  { %v2331_v16 = vpop.f32.mrb[25].mxu0 }
 0x3e3   :  { %v3336_v15 = vadd.f32 %v2331_v16, %v2330_v8  ;;  %v2333_v5 = vpop.f32.mrb[26].mxu0  ;;  %2226 = vmatmul.mubr.msk.bf16.gmra.mrb[36].mxu1 %vm260_vm1, %v1020_v31 }
 0x3e4   :  { %v2334_v7 = vpop.f32.mrb[27].mxu0  ;;  %1128 = vmatprep.mubr.bf16.mxu1 %v2780_v13 }
 0x3e5   :  { %v3340_v59 = vadd.f32 %v2334_v7, %v2333_v5  ;;  %v1007_v14 = vsub.f32 %v2905_v29, %v3336_v15 }
 0x3e7   :  { %v1008_v32 = vsub.f32 %v2908_v30, %v3340_v59 }
 0x3e9   :  { %v1021_v25 = vpack.c.bf16 %v1008_v32, %v1007_v14  ;;  %v2336_v42 = vpop.f32.mrb[28].mxu0 }
 0x3ea   :  { %v2337_v35 = vpop.f32.mrb[29].mxu0 }
 0x3eb   :  { %v3346_v6 = vadd.f32 %v2337_v35, %v2336_v42  ;;  %v2339_v1 = vpop.f32.mrb[30].mxu0  ;;  %2227 = vmatmul.mubr.msk.bf16.gmra.mrb[40].mxu1 %vm260_vm1, %v1021_v25 }
 0x3ec   :  { %v2340_v4 = vpop.f32.mrb[31].mxu0  ;;  %1138 = vmatprep.mubr.bf16.mxu1 %v2780_v13 }
 0x3ed   :  { %v3350_v22 = vadd.f32 %v2340_v4, %v2339_v1  ;;  %v1009_v0 = vsub.f32 %v2915_v38, %v3346_v6 }
 0x3ef   :  { %v1010_v61 = vsub.f32 %v2917_v39, %v3350_v22 }
 0x3f1   :  { %v1022_v26 = vpack.c.bf16 %v1010_v61, %v1009_v0  ;;  %v2342_v10 = vpop.f32.mrb[32].mxu0 }
 0x3f2   :  { %v2343_v28 = vpop.f32.mrb[33].mxu0 }
 0x3f3   :  { %v3356_v62 = vadd.f32 %v2343_v28, %v2342_v10  ;;  %v2345_v51 = vpop.f32.mrb[34].mxu0  ;;  %2228 = vmatmul.mubr.msk.bf16.gmra.mrb[44].mxu1 %vm260_vm1, %v1022_v26  ;;  %v2233_v26 = vld [vmem:[%s3918_s3 + $0x2] sm:$0x3]  ;;  %v3953_v28 = vsub.s32 1, %v2955_v56 }
 0x3f4   :  { %v2346_v12 = vpop.f32.mrb[35].mxu0  ;;  %1148 = vmatprep.mubr.bf16.mxu1 %v2780_v13  ;;  %v3402_v10 = vrot.slane %v2233_v26, %v434_v57 }
 0x3f5   :  { %v3360_v34 = vadd.f32 %v2346_v12, %v2345_v51  ;;  %v1011_v58 = vsub.f32 %v2921_v43, %v3356_v62  ;;  %v3406_v51 = vrot.slane %v2233_v26, %v3953_v28 }
 0x3f7   :  { %v1012_v54 = vsub.f32 %v2924_v44, %v3360_v34 }
 0x3f9   :  { %v1023_v11 = vpack.c.bf16 %v1012_v54, %v1011_v58  ;;  %v2348_v45 = vpop.f32.mrb[36].mxu0 }
 0x3fa   :  { %v2349_v9 = vpop.f32.mrb[37].mxu0 }
 0x3fb   :  { %v3366_v55 = vadd.f32 %v2349_v9, %v2348_v45  ;;  %v2351_v36 = vpop.f32.mrb[38].mxu0  ;;  %2229 = vmatmul.mubr.msk.bf16.gmra.mrb[48].mxu1 %vm260_vm1, %v1023_v11 }
 0x3fc   :  { %v2352_v63 = vpop.f32.mrb[39].mxu0  ;;  %1158 = vmatprep.mubr.bf16.mxu1 %v2780_v13 }
 0x3fd   :  { %3947 = vst [vmem:[#allocation15_spill] sm:$0xff] %v3366_v55  ;;  %v3370_v33 = vadd.f32 %v2352_v63, %v2351_v36  ;;  %v1013_v17 = vsub.f32 %v2931_v46, %v3366_v55 }
 0x3ff   :  { %3948 = vst [vmem:[#allocation16_spill] sm:$0xff] %v3370_v33  ;;  %v1014_v18 = vsub.f32 %v2933_v47, %v3370_v33 }
 0x401   :  { %v1024_v37 = vpack.c.bf16 %v1014_v18, %v1013_v17  ;;  %v2354_v23 = vpop.f32.mrb[40].mxu0 }
 0x402   :  { %v2355_v3 = vpop.f32.mrb[41].mxu0 }
 0x403   :  { %v3376_v21 = vadd.f32 %v2355_v3, %v2354_v23  ;;  %v2357_v48 = vpop.f32.mrb[42].mxu0  ;;  %2230 = vmatmul.mubr.msk.bf16.gmra.mrb[52].mxu1 %vm260_vm1, %v1024_v37 }
 0x404   :  { %v2358_v31 = vpop.f32.mrb[43].mxu0  ;;  %1168 = vmatprep.mubr.bf16.mxu1 %v2780_v13 }
 0x405   :  { %3949 = vst [vmem:[#allocation17_spill] sm:$0xff] %v3376_v21  ;;  %v3380_v8 = vadd.f32 %v2358_v31, %v2357_v48  ;;  %v1015_v16 = vsub.f32 %v2937_v49, %v3376_v21 }
 0x407   :  { %3950 = vst [vmem:[#allocation18_spill] sm:$0xff] %v3380_v8  ;;  %v1016_v5 = vsub.f32 %v2940_v50, %v3380_v8 }
 0x409   :  { %v1025_v7 = vpack.c.bf16 %v1016_v5, %v1015_v16  ;;  %v2360_v14 = vpop.f32.mrb[44].mxu0 }
 0x40a   :  { %v2361_v32 = vpop.f32.mrb[45].mxu0 }
 0x40b   :  { %v3386_v25 = vadd.f32 %v2361_v32, %v2360_v14  ;;  %v2363_v42 = vpop.f32.mrb[46].mxu0  ;;  %2231 = vmatmul.mubr.msk.bf16.gmra.mrb[56].mxu1 %vm260_vm1, %v1025_v7 }
 0x40c   :  { %v2364_v35 = vpop.f32.mrb[47].mxu0  ;;  %1178 = vmatprep.mubr.bf16.mxu1 %v2780_v13 }
 0x40d   :  { %3951 = vst [vmem:[#allocation19_spill] sm:$0xff] %v3386_v25  ;;  %v3390_v1 = vadd.f32 %v2364_v35, %v2363_v42  ;;  %v1017_v4 = vsub.f32 %v2947_v52, %v3386_v25 }
 0x40f   :  { %3952 = vst [vmem:[#allocation20_spill] sm:$0xff] %v3390_v1  ;;  %v1018_v0 = vsub.f32 %v2949_v53, %v3390_v1 }
 0x411   :  { %v1026_v61 = vpack.c.bf16 %v1018_v0, %v1017_v4 }
 0x413   :  { %2232 = vmatmul.mubr.msk.bf16.gmra.mrb[60].mxu1 %vm260_vm1, %v1026_v61 }
 0x4ae   :  { %v1110_v13 = vpop.f32.mrb[32].mxu1 }
 0x4af   :  { %v1189_v12 = vmul.f32 2.0, %v1110_v13  ;;  %v1112_v58 = vpop.f32.mrb[33].mxu1 }
 0x4b0   :  { %v1190_v54 = vmul.f32 2.0, %v1112_v58  ;;  %v1114_v11 = vpop.f32.mrb[34].mxu1 }
 0x4b1   :  { %v3409_v45 = vsub.f32 %v1189_v12, %v3402_v10  ;;  %v1191_v9 = vmul.f32 2.0, %v1114_v11  ;;  %v1116_v36 = vpop.f32.mrb[35].mxu1 }
 0x4b2   :  { %v3412_v63 = vsub.f32 %v1190_v54, %v3406_v51  ;;  %v1192_v17 = vmul.f32 2.0, %v1116_v36 }
 0x4b3   :  { %v3415_v57 = vsub.f32 %v1191_v9, %v3402_v10 }
 0x4b4   :  { %v3418_v56 = vsub.f32 %v1192_v17, %v3406_v51  ;;  %v1266_v18 = vmax.f32 %v3409_v45, %v3412_v63 }
 0x4b6   :  { %1267 = vmax.xlane.f32.xlu0 %v1266_v18  ;;  %v1120_v37 = vpop.f32.mrb[36].mxu1  ;;  %v1269_v23 = vmax.f32 %v3415_v57, %v3418_v56 }
 0x4b7   :  { %v1193_v3 = vmul.f32 2.0, %v1120_v37  ;;  %v1122_v48 = vpop.f32.mrb[37].mxu1 }
 0x4b8   :  { %v1194_v31 = vmul.f32 2.0, %v1122_v48  ;;  %1270 = vmax.xlane.f32.xlu1 %v1269_v23  ;;  %v1124_v16 = vpop.f32.mrb[38].mxu1 }
 0x4b9   :  { %v3425_v5 = vsub.f32 %v1193_v3, %v3402_v10  ;;  %v1195_v7 = vmul.f32 2.0, %v1124_v16  ;;  %v1126_v14 = vpop.f32.mrb[39].mxu1 }
 0x4ba   :  { %v3428_v32 = vsub.f32 %v1194_v31, %v3406_v51  ;;  %v1196_v42 = vmul.f32 2.0, %v1126_v14 }
 0x4bb   :  { %v3431_v35 = vsub.f32 %v1195_v7, %v3402_v10 }
 0x4bc   :  { %v3434_v4 = vsub.f32 %v1196_v42, %v3406_v51  ;;  %v1272_v0 = vmax.f32 %v3425_v5, %v3428_v32 }
 0x4be   :  { %1273 = vmax.xlane.f32.xlu0 %v1272_v0  ;;  %v1130_v61 = vpop.f32.mrb[40].mxu1  ;;  %v1275_v26 = vmax.f32 %v3431_v35, %v3434_v4 }
 0x4bf   :  { %v1197_v13 = vmul.f32 2.0, %v1130_v61  ;;  %v1132_v28 = vpop.f32.mrb[41].mxu1 }
 0x4c0   :  { %v1198_v12 = vmul.f32 2.0, %v1132_v28  ;;  %1276 = vmax.xlane.f32.xlu1 %v1275_v26  ;;  %v1134_v58 = vpop.f32.mrb[42].mxu1 }
 0x4c1   :  { %v3441_v54 = vsub.f32 %v1197_v13, %v3402_v10  ;;  %v1199_v11 = vmul.f32 2.0, %v1134_v58  ;;  %v1136_v9 = vpop.f32.mrb[43].mxu1 }
 0x4c2   :  { %v3444_v36 = vsub.f32 %v1198_v12, %v3406_v51  ;;  %v1200_v17 = vmul.f32 2.0, %v1136_v9 }
 0x4c3   :  { %v3447_v18 = vsub.f32 %v1199_v11, %v3402_v10 }
 0x4c4   :  { %v3450_v37 = vsub.f32 %v1200_v17, %v3406_v51  ;;  %v1278_v23 = vmax.f32 %v3441_v54, %v3444_v36 }
 0x4c6   :  { %1279 = vmax.xlane.f32.xlu0 %v1278_v23  ;;  %v1140_v3 = vpop.f32.mrb[44].mxu1  ;;  %v1281_v48 = vmax.f32 %v3447_v18, %v3450_v37 }
 0x4c7   :  { %v1201_v31 = vmul.f32 2.0, %v1140_v3  ;;  %v1142_v16 = vpop.f32.mrb[45].mxu1 }
 0x4c8   :  { %v1202_v7 = vmul.f32 2.0, %v1142_v16  ;;  %1282 = vmax.xlane.f32.xlu1 %v1281_v48  ;;  %v1144_v14 = vpop.f32.mrb[46].mxu1 }
 0x4c9   :  { %v3457_v42 = vsub.f32 %v1201_v31, %v3402_v10  ;;  %v1203_v0 = vmul.f32 2.0, %v1144_v14  ;;  %v1146_v61 = vpop.f32.mrb[47].mxu1 }
 0x4ca   :  { %v3460_v26 = vsub.f32 %v1202_v7, %v3406_v51  ;;  %v1204_v13 = vmul.f32 2.0, %v1146_v61 }
 0x4cb   :  { %v3463_v28 = vsub.f32 %v1203_v0, %v3402_v10 }
 0x4cc   :  { %v3466_v12 = vsub.f32 %v1204_v13, %v3406_v51  ;;  %v1284_v58 = vmax.f32 %v3457_v42, %v3460_v26 }
 0x4ce   :  { %1285 = vmax.xlane.f32.xlu0 %v1284_v58  ;;  %v1150_v11 = vpop.f32.mrb[48].mxu1  ;;  %v1287_v9 = vmax.f32 %v3463_v28, %v3466_v12 }
 0x4cf   :  { %v1205_v17 = vmul.f32 2.0, %v1150_v11  ;;  %v1152_v23 = vpop.f32.mrb[49].mxu1 }
 0x4d0   :  { %v1206_v3 = vmul.f32 2.0, %v1152_v23  ;;  %1288 = vmax.xlane.f32.xlu1 %v1287_v9  ;;  %v1154_v48 = vpop.f32.mrb[50].mxu1 }
 0x4d1   :  { %v3473_v31 = vsub.f32 %v1205_v17, %v3402_v10  ;;  %v1207_v16 = vmul.f32 2.0, %v1154_v48  ;;  %v1156_v7 = vpop.f32.mrb[51].mxu1 }
 0x4d2   :  { %v3476_v14 = vsub.f32 %v1206_v3, %v3406_v51  ;;  %v1208_v0 = vmul.f32 2.0, %v1156_v7 }
 0x4d3   :  { %v3479_v61 = vsub.f32 %v1207_v16, %v3402_v10 }
 0x4d4   :  { %v3482_v13 = vsub.f32 %v1208_v0, %v3406_v51  ;;  %v1290_v58 = vmax.f32 %v3473_v31, %v3476_v14 }
 0x4d6   :  { %1291 = vmax.xlane.f32.xlu0 %v1290_v58  ;;  %v1160_v11 = vpop.f32.mrb[52].mxu1  ;;  %v1293_v9 = vmax.f32 %v3479_v61, %v3482_v13 }
 0x4d7   :  { %v1209_v17 = vmul.f32 2.0, %v1160_v11  ;;  %v1162_v23 = vpop.f32.mrb[53].mxu1 }
 0x4d8   :  { %v1210_v48 = vmul.f32 2.0, %v1162_v23  ;;  %1294 = vmax.xlane.f32.xlu1 %v1293_v9  ;;  %v1164_v3 = vpop.f32.mrb[54].mxu1 }
 0x4d9   :  { %v3489_v7 = vsub.f32 %v1209_v17, %v3402_v10  ;;  %v1211_v16 = vmul.f32 2.0, %v1164_v3  ;;  %v1166_v53 = vpop.f32.mrb[55].mxu1 }
 0x4da   :  { %v3492_v0 = vsub.f32 %v1210_v48, %v3406_v51  ;;  %v1212_v1 = vmul.f32 2.0, %v1166_v53 }
 0x4db   :  { %v3495_v58 = vsub.f32 %v1211_v16, %v3402_v10 }
 0x4dc   :  { %v3498_v52 = vsub.f32 %v1212_v1, %v3406_v51  ;;  %v1296_v11 = vmax.f32 %v3489_v7, %v3492_v0 }
 0x4de   :  { %1297 = vmax.xlane.f32.xlu0 %v1296_v11  ;;  %v1170_v9 = vpop.f32.mrb[56].mxu1  ;;  %v1299_v17 = vmax.f32 %v3495_v58, %v3498_v52 }
 0x4df   :  { %v1213_v23 = vmul.f32 2.0, %v1170_v9  ;;  %v1172_v3 = vpop.f32.mrb[57].mxu1 }
 0x4e0   :  { %v1214_v25 = vmul.f32 2.0, %v1172_v3  ;;  %1300 = vmax.xlane.f32.xlu1 %v1299_v17  ;;  %v1174_v48 = vpop.f32.mrb[58].mxu1 }
 0x4e1   :  { %v3505_v53 = vsub.f32 %v1213_v23, %v3402_v10  ;;  %v1215_v16 = vmul.f32 2.0, %v1174_v48  ;;  %v1176_v50 = vpop.f32.mrb[59].mxu1 }
 0x4e2   :  { %v3508_v1 = vsub.f32 %v1214_v25, %v3406_v51  ;;  %v1216_v8 = vmul.f32 2.0, %v1176_v50 }
 0x4e3   :  { %v3511_v11 = vsub.f32 %v1215_v16, %v3402_v10 }
 0x4e4   :  { %v3514_v49 = vsub.f32 %v1216_v8, %v3406_v51  ;;  %v1302_v9 = vmax.f32 %v3505_v53, %v3508_v1 }
 0x4e6   :  { %1303 = vmax.xlane.f32.xlu0 %v1302_v9  ;;  %v1180_v17 = vpop.f32.mrb[60].mxu1  ;;  %v1305_v23 = vmax.f32 %v3511_v11, %v3514_v49 }
 0x4e7   :  { %v1217_v3 = vmul.f32 2.0, %v1180_v17  ;;  %v1182_v48 = vpop.f32.mrb[61].mxu1 }
 0x4e8   :  { %v1218_v21 = vmul.f32 2.0, %v1182_v48  ;;  %1306 = vmax.xlane.f32.xlu1 %v1305_v23  ;;  %v1184_v25 = vpop.f32.mrb[62].mxu1  ;;  %v2528_v48 = vld [vmem:[%s3919_s4 + $0xd8] sm:$0xff]  }
 0x4e9   :  { %v3521_v50 = vsub.f32 %v1217_v3, %v3402_v10  ;;  %v1219_v16 = vmul.f32 2.0, %v1184_v25  ;;  %v1186_v47 = vpop.f32.mrb[63].mxu1  ;;  %v2527_v3 = vld [vmem:[%s3919_s4 + $0x90] sm:$0xff]   ;;  %v2529_v25 = vld [vmem:[%s3919_s4 + $0x98] sm:$0xff]  }
 0x4ea   :  { %v3524_v8 = vsub.f32 %v1218_v21, %v3406_v51  ;;  %v1220_v33 = vmul.f32 2.0, %v1186_v47  ;;  %v2522_v21 = vld [vmem:[%s3919_s4 + $0xc0] sm:$0xff]  }
 0x4eb   :  { %v3527_v9 = vsub.f32 %v1219_v16, %v3402_v10  ;;  %v2523_v47 = vld [vmem:[%s3919_s4 + $0x80] sm:$0xff]   ;;  %2366 = vmatprep.subr.bf16.mxu0 %v2522_v21  ;;  %v2525_v10 = vld [vmem:[%s3919_s4 + $0x88] sm:$0xff]  }
 0x4ec   :  { %v3530_v46 = vsub.f32 %v1220_v33, %v3406_v51  ;;  %v1308_v17 = vmax.f32 %v3521_v50, %v3524_v8  ;;  %v2524_v33 = vld [vmem:[%s3919_s4 + $0xc8] sm:$0xff]   ;;  %2367 = vmatpush3.bf16.msra.mxu0 %v2523_v47  ;;  %v2526_v51 = vld [vmem:[%s3919_s4 + $0xd0] sm:$0xff]   ;;  %v2530_v16 = vld [vmem:[%s3919_s4 + $0xe0] sm:$0xff]  }
 0x4ed   :  { %2368 = vmatprep.subr.bf16.mxu0 %v2524_v33  ;;  %v2533_v21 = vld [vmem:[%s3919_s4 + $0xa8] sm:$0xff]  }
 0x4ee   :  { %1309 = vmax.xlane.f32.xlu0 %v1308_v17  ;;  %v1311_v23 = vmax.f32 %v3527_v9, %v3530_v46  ;;  %v2531_v17 = vld [vmem:[%s3919_s4 + $0xa0] sm:$0xff]  }
 0x4f0   :  { %1312 = vmax.xlane.f32.xlu1 %v1311_v23  ;;  %2369 = vmatpush3.bf16.msra.mxu0 %v2525_v10  ;;  %v2532_v23 = vld [vmem:[%s3919_s4 + $0xe8] sm:$0xff]  }
 0x4f1   :  { %2370 = vmatprep.subr.bf16.mxu0 %v2526_v51 }
 0x4f4   :  { %2371 = vmatpush3.bf16.msra.mxu0 %v2527_v3 }
 0x4f5   :  { %2372 = vmatprep.subr.bf16.mxu0 %v2528_v48 }
 0x4f8   :  { %2373 = vmatpush3.bf16.msra.mxu0 %v2529_v25 }
 0x4f9   :  { %2374 = vmatprep.subr.bf16.mxu0 %v2530_v16 }
 0x4fc   :  { %2375 = vmatpush3.bf16.msra.mxu0 %v2531_v17 }
 0x4fd   :  { %2376 = vmatprep.subr.bf16.mxu0 %v2532_v23 }
 0x500   :  { %2377 = vmatpush3.bf16.msra.mxu0 %v2533_v21 }
 0x543   :  { %v1268_v47 = vpop.xlane.xlu0 %1267 }
 0x544   :  { %v1314_v33 = vsub.f32 %v3409_v45, %v1268_v47  ;;  %v1315_v10 = vsub.f32 %v3412_v63, %v1268_v47 }
 0x545   :  { %v1271_v51 = vpop.xlane.xlu1 %1270 }
 0x546   :  { %v1346_v3 = vmul.f32 1.442695, %v1314_v33  ;;  %v1348_v48 = vmul.f32 1.442695, %v1315_v10  ;;  %v1316_v25 = vsub.f32 %v3415_v57, %v1271_v51  ;;  %v1317_v16 = vsub.f32 %v3418_v56, %v1271_v51 }
 0x548   :  { %2636 = vpow2.f32 %v1346_v3  ;;  %v1350_v17 = vmul.f32 1.442695, %v1316_v25  ;;  %v1352_v55 = vmul.f32 1.442695, %v1317_v16 }
 0x549   :  { %2638 = vpow2.f32 %v1348_v48 }
 0x54a   :  { %2640 = vpow2.f32 %v1350_v17 }
 0x54b   :  { %2642 = vpow2.f32 %v1352_v55  ;;  %v1274_v23 = vpop.xlane.xlu0 %1273 }
 0x54c   :  { %v1318_v21 = vsub.f32 %v3425_v5, %v1274_v23  ;;  %v1319_v45 = vsub.f32 %v3428_v32, %v1274_v23 }
 0x54d   :  { %v1277_v44 = vpop.xlane.xlu1 %1276 }
 0x54e   :  { %v1354_v63 = vmul.f32 1.442695, %v1318_v21  ;;  %v1356_v47 = vmul.f32 1.442695, %v1319_v45  ;;  %v1320_v33 = vsub.f32 %v3431_v35, %v1277_v44  ;;  %v1321_v57 = vsub.f32 %v3434_v4, %v1277_v44 }
 0x550   :  { %2644 = vpow2.f32 %v1354_v63  ;;  %v1358_v56 = vmul.f32 1.442695, %v1320_v33  ;;  %v1360_v10 = vmul.f32 1.442695, %v1321_v57 }
 0x551   :  { %2646 = vpow2.f32 %v1356_v47 }
 0x552   :  { %v3580_v51 = vpop.eup %2636  ;;  %2648 = vpow2.f32 %v1358_v56 }
 0x553   :  { %v3582_v55 = vpop.eup %2638  ;;  %2650 = vpow2.f32 %v1360_v10  ;;  %v1280_v5 = vpop.xlane.xlu0 %1279 }
 0x554   :  { %v3584_v3 = vpop.eup %2640  ;;  %v1322_v32 = vsub.f32 %v3441_v54, %v1280_v5  ;;  %v1323_v48 = vsub.f32 %v3444_v36, %v1280_v5  ;;  %v1410_v44 = vadd.f32 %v3582_v55, %v3580_v51 }
 0x555   :  { %v3590_v35 = vpop.eup %2642  ;;  %v1283_v4 = vpop.xlane.xlu1 %1282 }
 0x556   :  { %v1362_v25 = vmul.f32 1.442695, %v1322_v32  ;;  %v1364_v16 = vmul.f32 1.442695, %v1323_v48  ;;  %1411 = vadd.xlane.f32.xlu0 %v1410_v44  ;;  %v1324_v17 = vsub.f32 %v3447_v18, %v1283_v4  ;;  %v1325_v23 = vsub.f32 %v3450_v37, %v1283_v4 }
 0x557   :  { %v1413_v21 = vadd.f32 %v3590_v35, %v3584_v3 }
 0x558   :  { %2652 = vpow2.f32 %v1362_v25  ;;  %v1366_v54 = vmul.f32 1.442695, %v1324_v17  ;;  %v1368_v45 = vmul.f32 1.442695, %v1325_v23 }
 0x559   :  { %2654 = vpow2.f32 %v1364_v16  ;;  %1414 = vadd.xlane.f32.xlu1 %v1413_v21 }
 0x55a   :  { %v3596_v36 = vpop.eup %2644  ;;  %2656 = vpow2.f32 %v1366_v54 }
 0x55b   :  { %v3598_v63 = vpop.eup %2646  ;;  %2658 = vpow2.f32 %v1368_v45  ;;  %v1286_v47 = vpop.xlane.xlu0 %1285 }
 0x55c   :  { %v3600_v33 = vpop.eup %2648  ;;  %v1326_v18 = vsub.f32 %v3457_v42, %v1286_v47  ;;  %v1327_v37 = vsub.f32 %v3460_v26, %v1286_v47  ;;  %v1416_v57 = vadd.f32 %v3598_v63, %v3596_v36 }
 0x55d   :  { %v3606_v56 = vpop.eup %2650  ;;  %v1289_v10 = vpop.xlane.xlu1 %1288 }
 0x55e   :  { %v1370_v5 = vmul.f32 1.442695, %v1326_v18  ;;  %v1372_v32 = vmul.f32 1.442695, %v1327_v37  ;;  %1417 = vadd.xlane.f32.xlu0 %v1416_v57  ;;  %v1328_v48 = vsub.f32 %v3463_v28, %v1289_v10  ;;  %v1329_v44 = vsub.f32 %v3466_v12, %v1289_v10 }
 0x55f   :  { %v1419_v4 = vadd.f32 %v3606_v56, %v3600_v33 }
 0x560   :  { %2660 = vpow2.f32 %v1370_v5  ;;  %v1374_v42 = vmul.f32 1.442695, %v1328_v48  ;;  %v1376_v25 = vmul.f32 1.442695, %v1329_v44 }
 0x561   :  { %2662 = vpow2.f32 %v1372_v32  ;;  %1420 = vadd.xlane.f32.xlu1 %v1419_v4 }
 0x562   :  { %v3612_v26 = vpop.eup %2652  ;;  %2664 = vpow2.f32 %v1374_v42 }
 0x563   :  { %v3614_v16 = vpop.eup %2654  ;;  %2666 = vpow2.f32 %v1376_v25  ;;  %v1292_v17 = vpop.xlane.xlu0 %1291 }
 0x564   :  { %v3616_v23 = vpop.eup %2656  ;;  %v1330_v28 = vsub.f32 %v3473_v31, %v1292_v17  ;;  %v1331_v12 = vsub.f32 %v3476_v14, %v1292_v17  ;;  %v1422_v21 = vadd.f32 %v3614_v16, %v3612_v26  ;;  %v2534_v17 = vld [vmem:[%s3919_s4 + $0xf0] sm:$0xff]  }
 0x565   :  { %v3622_v54 = vpop.eup %2658  ;;  %v1295_v45 = vpop.xlane.xlu1 %1294  ;;  %2378 = vmatprep.subr.bf16.mxu0 %v2534_v17 }
 0x566   :  { %v1378_v47 = vmul.f32 1.442695, %v1330_v28  ;;  %v1380_v18 = vmul.f32 1.442695, %v1331_v12  ;;  %1423 = vadd.xlane.f32.xlu0 %v1422_v21  ;;  %v1332_v37 = vsub.f32 %v3479_v61, %v1295_v45  ;;  %v1333_v57 = vsub.f32 %v3482_v13, %v1295_v45 }
 0x567   :  { %v1425_v10 = vadd.f32 %v3622_v54, %v3616_v23 }
 0x568   :  { %2668 = vpow2.f32 %v1378_v47  ;;  %v1382_v31 = vmul.f32 1.442695, %v1332_v37  ;;  %v1384_v5 = vmul.f32 1.442695, %v1333_v57 }
 0x569   :  { %2670 = vpow2.f32 %v1380_v18  ;;  %1426 = vadd.xlane.f32.xlu1 %v1425_v10 }
 0x56a   :  { %v3628_v14 = vpop.eup %2660  ;;  %2672 = vpow2.f32 %v1382_v31 }
 0x56b   :  { %v3630_v32 = vpop.eup %2662  ;;  %2674 = vpow2.f32 %v1384_v5  ;;  %v1298_v48 = vpop.xlane.xlu0 %1297 }
 0x56c   :  { %v3632_v44 = vpop.eup %2664  ;;  %v1334_v61 = vsub.f32 %v3489_v7, %v1298_v48  ;;  %v1335_v13 = vsub.f32 %v3492_v0, %v1298_v48  ;;  %v1428_v4 = vadd.f32 %v3630_v32, %v3628_v14  ;;  %v2535_v7 = vld [vmem:[%s3919_s4 + $0xb0] sm:$0xff]  }
 0x56d   :  { %v3638_v42 = vpop.eup %2666  ;;  %v1301_v25 = vpop.xlane.xlu1 %1300  ;;  %2379 = vmatpush3.bf16.msra.mxu0 %v2535_v7 }
 0x56e   :  { %v1386_v28 = vmul.f32 1.442695, %v1334_v61  ;;  %v1388_v12 = vmul.f32 1.442695, %v1335_v13  ;;  %1429 = vadd.xlane.f32.xlu0 %v1428_v4  ;;  %v1336_v21 = vsub.f32 %v3495_v58, %v1301_v25  ;;  %v1337_v45 = vsub.f32 %v3498_v52, %v1301_v25  ;;  %v2536_v58 = vld [vmem:[%s3919_s4 + $0xf8] sm:$0xff]  }
 0x56f   :  { %v1431_v0 = vadd.f32 %v3638_v42, %v3632_v44  ;;  %v2537_v52 = vld [vmem:[%s3919_s4 + $0xb8] sm:$0xff]   ;;  %2380 = vmatprep.subr.bf16.mxu0 %v2536_v58 }
 0x570   :  { %2676 = vpow2.f32 %v1386_v28  ;;  %v1390_v47 = vmul.f32 1.442695, %v1336_v21  ;;  %v1392_v18 = vmul.f32 1.442695, %v1337_v45 }
 0x571   :  { %2678 = vpow2.f32 %v1388_v12  ;;  %1432 = vadd.xlane.f32.xlu1 %v1431_v0  ;;  %2381 = vmatpush3.bf16.msra.mxu0 %v2537_v52 }
 0x572   :  { %v3653_v37 = vpop.eup %2668  ;;  %2680 = vpow2.f32 %v1390_v47 }
 0x573   :  { %v3658_v57 = vpop.eup %2670  ;;  %2682 = vpow2.f32 %v1392_v18  ;;  %v1304_v10 = vpop.xlane.xlu0 %1303 }
 0x574   :  { %v3660_v31 = vpop.eup %2672  ;;  %v1338_v5 = vsub.f32 %v3505_v53, %v1304_v10  ;;  %v1339_v48 = vsub.f32 %v3508_v1, %v1304_v10  ;;  %v1434_v61 = vadd.f32 %v3658_v57, %v3653_v37 }
 0x575   :  { %v3666_v13 = vpop.eup %2674  ;;  %v1307_v4 = vpop.xlane.xlu1 %1306 }
 0x576   :  { %v1394_v25 = vmul.f32 1.442695, %v1338_v5  ;;  %v1396_v17 = vmul.f32 1.442695, %v1339_v48  ;;  %1435 = vadd.xlane.f32.xlu0 %v1434_v61  ;;  %v1340_v28 = vsub.f32 %v3511_v11, %v1307_v4  ;;  %v1341_v12 = vsub.f32 %v3514_v49, %v1307_v4 }
 0x577   :  { %v1437_v21 = vadd.f32 %v3666_v13, %v3660_v31 }
 0x578   :  { %2684 = vpow2.f32 %v1394_v25  ;;  %v1398_v53 = vmul.f32 1.442695, %v1340_v28  ;;  %v1400_v1 = vmul.f32 1.442695, %v1341_v12 }
 0x579   :  { %2686 = vpow2.f32 %v1396_v17  ;;  %1438 = vadd.xlane.f32.xlu1 %v1437_v21 }
 0x57a   :  { %v3672_v45 = vpop.eup %2676  ;;  %2688 = vpow2.f32 %v1398_v53 }
 0x57b   :  { %v3674_v7 = vpop.eup %2678  ;;  %2690 = vpow2.f32 %v1400_v1  ;;  %v1310_v0 = vpop.xlane.xlu0 %1309 }
 0x57c   :  { %v3676_v47 = vpop.eup %2680  ;;  %v1342_v11 = vsub.f32 %v3521_v50, %v1310_v0  ;;  %v1343_v49 = vsub.f32 %v3524_v8, %v1310_v0  ;;  %v1440_v18 = vadd.f32 %v3674_v7, %v3672_v45 }
 0x57d   :  { %v3682_v58 = vpop.eup %2682  ;;  %v1313_v52 = vpop.xlane.xlu1 %1312 }
 0x57e   :  { %v1402_v10 = vmul.f32 1.442695, %v1342_v11  ;;  %v1404_v5 = vmul.f32 1.442695, %v1343_v49  ;;  %1441 = vadd.xlane.f32.xlu0 %v1440_v18  ;;  %v1344_v48 = vsub.f32 %v3527_v9, %v1313_v52  ;;  %v1345_v61 = vsub.f32 %v3530_v46, %v1313_v52  ;;  %v2538_v18 = vld [vmem:[%s3921_s6] sm:$0xff]  }
 0x57f   :  { %v1443_v4 = vadd.f32 %v3682_v58, %v3676_v47  ;;  %2458 = vmatprep.subr.bf16.mxu1 %v2538_v18 }
 0x580   :  { %2692 = vpow2.f32 %v1402_v10  ;;  %v1406_v50 = vmul.f32 1.442695, %v1344_v48  ;;  %v1408_v25 = vmul.f32 1.442695, %v1345_v61  ;;  %2459 = vmatpush3.bf16.msra.mxu1 %v2538_v18 }
 0x581   :  { %2694 = vpow2.f32 %v1404_v5  ;;  %1444 = vadd.xlane.f32.xlu1 %v1443_v4 }
 0x582   :  { %v3688_v8 = vpop.eup %2684  ;;  %2696 = vpow2.f32 %v1406_v50 }
 0x583   :  { %v3690_v17 = vpop.eup %2686  ;;  %2698 = vpow2.f32 %v1408_v25 }
 0x584   :  { %v3692_v28 = vpop.eup %2688  ;;  %v1446_v9 = vadd.f32 %v3690_v17, %v3688_v8 }
 0x585   :  { %v3696_v46 = vpop.eup %2690 }
 0x586   :  { %1447 = vadd.xlane.f32.xlu0 %v1446_v9  ;;  %v1449_v12 = vadd.f32 %v3696_v46, %v3692_v28 }
 0x588   :  { %1450 = vadd.xlane.f32.xlu1 %v1449_v12 }
 0x58a   :  { %v3700_v21 = vpop.eup %2692 }
 0x58b   :  { %v3702_v53 = vpop.eup %2694 }
 0x58c   :  { %v3704_v1 = vpop.eup %2696  ;;  %v1452_v0 = vadd.f32 %v3702_v53, %v3700_v21 }
 0x58d   :  { %v3708_v11 = vpop.eup %2698 }
 0x58e   :  { %1453 = vadd.xlane.f32.xlu0 %v1452_v0  ;;  %v1455_v49 = vadd.f32 %v3708_v11, %v3704_v1 }
 0x590   :  { %1456 = vadd.xlane.f32.xlu1 %v1455_v49 }
 0x5e3   :  { %v1412_v52 = vpop.xlane.xlu0 %1411 }
 0x5e4   :  { %2700 = vrcp.f32 %v1412_v52 }
 0x5e6   :  { %v1415_v10 = vpop.xlane.xlu1 %1414 }
 0x5e7   :  { %2702 = vrcp.f32 %v1415_v10 }
 0x5eb   :  { %v1418_v5 = vpop.xlane.xlu0 %1417 }
 0x5ec   :  { %2704 = vrcp.f32 %v1418_v5 }
 0x5ee   :  { %v2701_v48 = vpop.eup %2700  ;;  %v1421_v61 = vpop.xlane.xlu1 %1420 }
 0x5ef   :  { %v1459_v4 = vmul.f32 %v2701_v48, %v3580_v51  ;;  %2706 = vrcp.f32 %v1421_v61  ;;  %v1460_v50 = vmul.f32 %v2701_v48, %v3582_v55 }
 0x5f1   :  { %v2703_v25 = vpop.eup %2702  ;;  %1506 = vst [vmem:[#allocation2 + $0x10] sm:$0xff] %v1459_v4  ;;  %1507 = vst [vmem:[#allocation2 + $0x18] sm:$0xff] %v1460_v50 }
 0x5f2   :  { %v1462_v9 = vmul.f32 %v2703_v25, %v3584_v3  ;;  %v1463_v12 = vmul.f32 %v2703_v25, %v3590_v35 }
 0x5f3   :  { %v1424_v0 = vpop.xlane.xlu0 %1423 }
 0x5f4   :  { %1508 = vst [vmem:[#allocation2 + $0x30] sm:$0xff] %v1462_v9  ;;  %2708 = vrcp.f32 %v1424_v0  ;;  %1509 = vst [vmem:[#allocation2 + $0x38] sm:$0xff] %v1463_v12  ;;  %v1539_v49 = vpack.c.bf16 %v1463_v12, %v1460_v50  ;;  %v1538_v18 = vpack.c.bf16 %v1462_v9, %v1459_v4 }
 0x5f6   :  { %v2705_v52 = vpop.eup %2704  ;;  %1715 = vmatprep.mubr.bf16.mxu0 %v1539_v49  ;;  %v1427_v10 = vpop.xlane.xlu1 %1426 }
 0x5f7   :  { %2710 = vrcp.f32 %v1427_v10  ;;  %1716 = vmatmul.mubr.bf16.vlgmr.msra.gmra.mrb[48].mxu0 %v1538_v18  ;;  %v1466_v51 = vmul.f32 %v2705_v52, %v3598_v63  ;;  %v1465_v55 = vmul.f32 %v2705_v52, %v3596_v36 }
 0x5f9   :  { %v2707_v5 = vpop.eup %2706  ;;  %1511 = vst [vmem:[#allocation2 + $0x58] sm:$0xff] %v1466_v51  ;;  %1510 = vst [vmem:[#allocation2 + $0x50] sm:$0xff] %v1465_v55 }
 0x5fa   :  { %v1469_v3 = vmul.f32 %v2707_v5, %v3606_v56  ;;  %v1468_v35 = vmul.f32 %v2707_v5, %v3600_v33 }
 0x5fb   :  { %v1430_v48 = vpop.xlane.xlu0 %1429 }
 0x5fc   :  { %2712 = vrcp.f32 %v1430_v48  ;;  %1513 = vst [vmem:[#allocation2 + $0x78] sm:$0xff] %v1469_v3  ;;  %v1541_v61 = vpack.c.bf16 %v1469_v3, %v1466_v51  ;;  %1512 = vst [vmem:[#allocation2 + $0x70] sm:$0xff] %v1468_v35  ;;  %v1540_v4 = vpack.c.bf16 %v1468_v35, %v1465_v55 }
 0x5fe   :  { %v2709_v50 = vpop.eup %2708  ;;  %1723 = vmatprep.mubr.bf16.mxu0 %v1541_v61  ;;  %v1433_v25 = vpop.xlane.xlu1 %1432 }
 0x5ff   :  { %2714 = vrcp.f32 %v1433_v25  ;;  %1724 = vmatmul.mubr.bf16.gmra.mrb[52].mxu0 %v1540_v4  ;;  %v1472_v36 = vmul.f32 %v2709_v50, %v3614_v16  ;;  %v1471_v63 = vmul.f32 %v2709_v50, %v3612_v26 }
 0x601   :  { %v2711_v9 = vpop.eup %2710  ;;  %1515 = vst [vmem:[#allocation2 + $0x98] sm:$0xff] %v1472_v36  ;;  %1514 = vst [vmem:[#allocation2 + $0x90] sm:$0xff] %v1471_v63 }
 0x602   :  { %v1475_v33 = vmul.f32 %v2711_v9, %v3622_v54  ;;  %v1474_v56 = vmul.f32 %v2711_v9, %v3616_v23 }
 0x603   :  { %v1436_v12 = vpop.xlane.xlu0 %1435 }
 0x604   :  { %2716 = vrcp.f32 %v1436_v12  ;;  %1517 = vst [vmem:[#allocation2 + $0xb8] sm:$0xff] %v1475_v33  ;;  %v1543_v0 = vpack.c.bf16 %v1475_v33, %v1472_v36  ;;  %1516 = vst [vmem:[#allocation2 + $0xb0] sm:$0xff] %v1474_v56  ;;  %v1542_v49 = vpack.c.bf16 %v1474_v56, %v1471_v63 }
 0x606   :  { %v2713_v18 = vpop.eup %2712  ;;  %1731 = vmatprep.mubr.bf16.mxu0 %v1543_v0  ;;  %v1439_v52 = vpop.xlane.xlu1 %1438 }
 0x607   :  { %2718 = vrcp.f32 %v1439_v52  ;;  %1732 = vmatmul.mubr.bf16.gmra.mrb[56].mxu0 %v1542_v49  ;;  %v1478_v26 = vmul.f32 %v2713_v18, %v3630_v32  ;;  %v1477_v16 = vmul.f32 %v2713_v18, %v3628_v14 }
 0x609   :  { %v2715_v10 = vpop.eup %2714  ;;  %1519 = vst [vmem:[#allocation2 + $0xd8] sm:$0xff] %v1478_v26  ;;  %1518 = vst [vmem:[#allocation2 + $0xd0] sm:$0xff] %v1477_v16 }
 0x60a   :  { %v1481_v23 = vmul.f32 %v2715_v10, %v3638_v42  ;;  %v1480_v54 = vmul.f32 %v2715_v10, %v3632_v44 }
 0x60b   :  { %v1442_v51 = vpop.xlane.xlu0 %1441 }
 0x60c   :  { %2720 = vrcp.f32 %v1442_v51  ;;  %1521 = vst [vmem:[#allocation2 + $0xf8] sm:$0xff] %v1481_v23  ;;  %v1545_v55 = vpack.c.bf16 %v1481_v23, %v1478_v26  ;;  %1520 = vst [vmem:[#allocation2 + $0xf0] sm:$0xff] %v1480_v54  ;;  %v1544_v5 = vpack.c.bf16 %v1480_v54, %v1477_v16  ;;  %v2539_v54 = vld [vmem:[%s3921_s6 + $0x8] sm:$0xff]   ;;  %s2781_s6 = smov [#allocation2]  }
 0x60d   :  { %2460 = vmatprep.subr.bf16.mxu1 %v2539_v54  ;;  %s2144_s23 = sshll.u32 %s2781_s6, 4  ;;  %s2145_s23 = int_to_ptr.vmem [resolvable:$true] %s2144_s23 }
 0x60e   :  { %v2717_v3 = vpop.eup %2716  ;;  %1739 = vmatprep.mubr.bf16.mxu0 %v1545_v55  ;;  %v1445_v35 = vpop.xlane.xlu1 %1444  ;;  %2461 = vmatpush3.bf16.msra.mxu1 %v2539_v54  ;;  %s2732_s24 = scalar_lea.vmem %s2145_s23, 8192  ;;  %p2737_p1 = scmp.lt.s32.totalorder %s2145_s23, %s2145_s23 }
 0x60f   :  { %2722 = vrcp.f32 %v1445_v35  ;;  %1740 = vmatmul.mubr.bf16.gmra.mrb[60].mxu0 %v1544_v5  ;;  %v1484_v14 = vmul.f32 %v2717_v3, %v3658_v57  ;;  %v1483_v32 = vmul.f32 %v2717_v3, %v3653_v37  ;;  %p2733_p0 = scmp.ne.s32.totalorder %s2145_s23, %s2732_s24  ;;  %p2738_p2 = scmp.lt.s32.totalorder %s2732_s24, %s2732_s24 }
 0x611   :  { %v2719_v48 = vpop.eup %2718  ;;  %1523 = vst [vmem:[#allocation2 + $0x118] sm:$0xff] %v1484_v14  ;;  %1522 = vst [vmem:[#allocation2 + $0x110] sm:$0xff] %v1483_v32  ;;  %p2739_p3 = por %p2738_p2, %p2737_p1 }
 0x612   :  { %v1487_v44 = vmul.f32 %v2719_v48, %v3666_v13  ;;  %v1486_v42 = vmul.f32 %v2719_v48, %v3660_v31 }
 0x613   :  { %v1448_v61 = vpop.xlane.xlu0 %1447  ;;  %p2740_p4 = pnand %p2739_p3, %p2733_p0 }
 0x614   :  { %2724 = vrcp.f32 %v1448_v61  ;;  %1525 = vst [vmem:[#allocation2 + $0x138] sm:$0xff] %v1487_v44  ;;  %v1547_v4 = vpack.c.bf16 %v1487_v44, %v1484_v14  ;;  %1524 = vst [vmem:[#allocation2 + $0x130] sm:$0xff] %v1486_v42  ;;  %v1546_v50 = vpack.c.bf16 %v1486_v42, %v1483_v32 }
 0x615   :  { %v1451_v25 = vpop.xlane.xlu1 %1450 }
 0x616   :  { %v2721_v36 = vpop.eup %2720  ;;  %1747 = vmatprep.mubr.bf16.mxu0 %v1547_v4  ;;  %2726 = vrcp.f32 %v1451_v25 }
 0x617   :  { %1748 = vmatmul.mubr.bf16.gmra.mrb[64].mxu0 %v1546_v50  ;;  %v1490_v37 = vmul.f32 %v2721_v36, %v3674_v7  ;;  %v1489_v57 = vmul.f32 %v2721_v36, %v3672_v45 }
 0x619   :  { %v2723_v63 = vpop.eup %2722  ;;  %1527 = vst [vmem:[#allocation2 + $0x158] sm:$0xff] %v1490_v37  ;;  %1526 = vst [vmem:[#allocation2 + $0x150] sm:$0xff] %v1489_v57 }
 0x61a   :  { %v1493_v31 = vmul.f32 %v2723_v63, %v3682_v58  ;;  %v1492_v13 = vmul.f32 %v2723_v63, %v3676_v47 }
 0x61b   :  { %v1454_v9 = vpop.xlane.xlu0 %1453 }
 0x61c   :  { %2728 = vrcp.f32 %v1454_v9  ;;  %1529 = vst [vmem:[#allocation2 + $0x178] sm:$0xff] %v1493_v31  ;;  %v1549_v33 = vpack.c.bf16 %v1493_v31, %v1490_v37  ;;  %1528 = vst [vmem:[#allocation2 + $0x170] sm:$0xff] %v1492_v13  ;;  %v1548_v56 = vpack.c.bf16 %v1492_v13, %v1489_v57 }
 0x61d   :  { %v1457_v12 = vpop.xlane.xlu1 %1456 }
 0x61e   :  { %v2725_v0 = vpop.eup %2724  ;;  %1755 = vmatprep.mubr.bf16.mxu0 %v1549_v33  ;;  %2730 = vrcp.f32 %v1457_v12 }
 0x61f   :  { %1756 = vmatmul.mubr.bf16.gmra.mrb[68].mxu0 %v1548_v56  ;;  %v1496_v45 = vmul.f32 %v2725_v0, %v3690_v17  ;;  %v1495_v7 = vmul.f32 %v2725_v0, %v3688_v8 }
 0x620   :  { %v2727_v49 = vpop.eup %2726 }
 0x621   :  { %v1499_v58 = vmul.f32 %v2727_v49, %v3696_v46  ;;  %1531 = vst [vmem:[#allocation2 + $0x198] sm:$0xff] %v1496_v45  ;;  %v1498_v47 = vmul.f32 %v2727_v49, %v3692_v28  ;;  %1530 = vst [vmem:[#allocation2 + $0x190] sm:$0xff] %v1495_v7 }
 0x623   :  { %1533 = vst [vmem:[#allocation2 + $0x1b8] sm:$0xff] %v1499_v58  ;;  %v1551_v18 = vpack.c.bf16 %v1499_v58, %v1496_v45  ;;  %1532 = vst [vmem:[#allocation2 + $0x1b0] sm:$0xff] %v1498_v47  ;;  %v1550_v52 = vpack.c.bf16 %v1498_v47, %v1495_v7 }
 0x625   :  { %1763 = vmatprep.mubr.bf16.mxu0 %v1551_v18 }
 0x626   :  { %v2729_v26 = vpop.eup %2728 }
 0x627   :  { %1764 = vmatmul.mubr.bf16.gmra.mrb[72].mxu0 %v1550_v52  ;;  %v1502_v16 = vmul.f32 %v2729_v26, %v3702_v53  ;;  %v1501_v17 = vmul.f32 %v2729_v26, %v3700_v21 }
 0x628   :  { %v2731_v10 = vpop.eup %2730 }
 0x629   :  { %v1505_v8 = vmul.f32 %v2731_v10, %v3708_v11  ;;  %1535 = vst [vmem:[#allocation2 + $0x1d8] sm:$0xff] %v1502_v16  ;;  %v1504_v46 = vmul.f32 %v2731_v10, %v3704_v1  ;;  %1534 = vst [vmem:[#allocation2 + $0x1d0] sm:$0xff] %v1501_v17 }
 0x62b   :  { %1537 = vst [vmem:[#allocation2 + $0x1f8] sm:$0xff] %v1505_v8  ;;  %v1553_v28 = vpack.c.bf16 %v1505_v8, %v1502_v16  ;;  %1536 = vst [vmem:[#allocation2 + $0x1f0] sm:$0xff] %v1504_v46  ;;  %v1552_v23 = vpack.c.bf16 %v1504_v46, %v1501_v17 }
 0x62d   :  { %1771 = vmatprep.mubr.bf16.mxu0 %v1553_v28 }
 0x62f   :  { %1772 = vmatmul.mubr.bf16.gmra.mrb[76].mxu0 %v1552_v23 }
 0x6ca   :  { %v2382_v21 = vpop.f32.mrb[48].mxu0 }
 0x6cb   :  { %v2383_v53 = vpop.f32.mrb[49].mxu0 }
 0x6cc   :  { %v2384_v51 = vadd.f32 %v2383_v53, %v2382_v21  ;;  %v2385_v11 = vpop.f32.mrb[50].mxu0 }
 0x6cd   :  { %v2386_v55 = vpop.f32.mrb[51].mxu0 }
 0x6ce   :  { %v1780_v1 = vadd.f32 %v2384_v51, %v3318_v2  ;;  %v2387_v5 = vadd.f32 %v2386_v55, %v2385_v11 }
 0x6d0   :  { %v2047_v3 = vsub.f32 %v2891_v19, %v1780_v1  ;;  %v1781_v35 = vadd.f32 %v2387_v5, %v3320_v60 }
 0x6d2   :  { %v2063_v14 = vmul.f32 %v2047_v3, %v2047_v3  ;;  %v1796_v32 = vpack.c.bf16 %v1781_v35, %v1780_v1  ;;  %v2048_v48 = vsub.f32 %v2893_v20, %v1781_v35  ;;  %v2388_v44 = vpop.f32.mrb[52].mxu0 }
 0x6d3   :  { %v2389_v42 = vpop.f32.mrb[53].mxu0 }
 0x6d4   :  { %v2064_v61 = vmul.f32 %v2048_v48, %v2048_v48  ;;  %v2390_v4 = vadd.f32 %v2389_v42, %v2388_v44  ;;  %v2391_v50 = vpop.f32.mrb[54].mxu0  ;;  %2462 = vmatprep.mubr.msk.bf16.mxu1 %vm260_vm1, %v1796_v32  ;;  %v2095_v36 = vsel %vm260_vm1, %v2063_v14, 0.0 }
 0x6d5   :  { %v2392_v25 = vpop.f32.mrb[55].mxu0 }
 0x6d6   :  { %v2096_v2 = vsel %vm260_vm1, %v2064_v61, 0.0  ;;  %v1782_v19 = vadd.f32 %v2390_v4, %v3326_v41  ;;  %v2393_v37 = vadd.f32 %v2392_v25, %v2391_v50 }
 0x6d7   :  { %v2097_v60 = vadd.f32 %v2096_v2, %v2095_v36 }
 0x6d8   :  { %v2049_v57 = vsub.f32 %v2901_v27, %v1782_v19  ;;  %v1783_v20 = vadd.f32 %v2393_v37, %v3330_v40  ;;  %v3954_v37 = vld [vmem:[#allocation8_spill] sm:$0xff] }
 0x6da   :  { %v2065_v63 = vmul.f32 %v2049_v57, %v2049_v57  ;;  %v1797_v31 = vpack.c.bf16 %v1783_v20, %v1782_v19  ;;  %v2050_v13 = vsub.f32 %v2899_v24, %v1783_v20  ;;  %v2394_v9 = vpop.f32.mrb[56].mxu0 }
 0x6db   :  { %v2395_v33 = vpop.f32.mrb[57].mxu0 }
 0x6dc   :  { %v2098_v56 = vsel %vm260_vm1, %v2065_v63, 0.0  ;;  %v2066_v12 = vmul.f32 %v2050_v13, %v2050_v13  ;;  %v2396_v0 = vadd.f32 %v2395_v33, %v2394_v9  ;;  %v2397_v45 = vpop.f32.mrb[58].mxu0  ;;  %2463 = vmatmul.mubr.msk.bf16.vlgmr.msra.gmra.mrb[64].mxu1 %vm260_vm1, %v1797_v31 }
 0x6dd   :  { %v2099_v41 = vadd.f32 %v2098_v56, %v2097_v60  ;;  %v2398_v7 = vpop.f32.mrb[59].mxu0 }
 0x6de   :  { %v2100_v49 = vsel %vm260_vm1, %v2066_v12, 0.0  ;;  %v1784_v27 = vadd.f32 %v2396_v0, %v3336_v15  ;;  %v2399_v40 = vadd.f32 %v2398_v7, %v2397_v45 }
 0x6df   :  { %v2101_v58 = vadd.f32 %v2100_v49, %v2099_v41  ;;  %v3956_v41 = vld [vmem:[#allocation9_spill] sm:$0xff]  ;;  %v3957_v49 = vld [vmem:[#allocation16_spill] sm:$0xff] }
 0x6e0   :  { %v2051_v47 = vsub.f32 %v2905_v29, %v1784_v27  ;;  %v1785_v24 = vadd.f32 %v2399_v40, %v3340_v59 }
 0x6e2   :  { %v2067_v18 = vmul.f32 %v2051_v47, %v2051_v47  ;;  %v1798_v52 = vpack.c.bf16 %v1785_v24, %v1784_v27  ;;  %v2052_v26 = vsub.f32 %v2908_v30, %v1785_v24  ;;  %v2400_v16 = vpop.f32.mrb[60].mxu0  ;;  %v3958_v24 = vld [vmem:[#allocation10_spill] sm:$0xff] }
 0x6e3   :  { %v2401_v17 = vpop.f32.mrb[61].mxu0 }
 0x6e4   :  { %v2083_v10 = vmul.f32 0.0, %v2067_v18  ;;  %v2068_v8 = vmul.f32 %v2052_v26, %v2052_v26  ;;  %v2402_v46 = vadd.f32 %v2401_v17, %v2400_v16  ;;  %v2403_v28 = vpop.f32.mrb[62].mxu0  ;;  %2466 = vmatprep.mubr.msk.bf16.mxu1 %vm260_vm1, %v1798_v52 }
 0x6e5   :  { %v2404_v23 = vpop.f32.mrb[63].mxu0 }
 0x6e6   :  { %v2102_v15 = vsel %vm260_vm1, %v2083_v10, 0.0  ;;  %v2084_v54 = vmul.f32 0.0, %v2068_v8  ;;  %v1786_v29 = vadd.f32 %v2402_v46, %v3346_v6  ;;  %v2405_v21 = vadd.f32 %v2404_v23, %v2403_v28 }
 0x6e7   :  { %v2103_v59 = vadd.f32 %v2102_v15, %v2101_v58  ;;  %v3959_v15 = vld [vmem:[#allocation17_spill] sm:$0xff] }
 0x6e8   :  { %v2104_v53 = vsel %vm260_vm1, %v2084_v54, 0.0  ;;  %v2053_v30 = vsub.f32 %v2915_v38, %v1786_v29  ;;  %v1787_v51 = vadd.f32 %v2405_v21, %v3350_v22 }
 0x6e9   :  { %v2105_v11 = vadd.f32 %v2104_v53, %v2103_v59  ;;  %v3960_v53 = vld [vmem:[#allocation11_spill] sm:$0xff] }
 0x6ea   :  { %v2069_v55 = vmul.f32 %v2053_v30, %v2053_v30  ;;  %v1799_v1 = vpack.c.bf16 %v1787_v51, %v1786_v29  ;;  %v2054_v5 = vsub.f32 %v2917_v39, %v1787_v51  ;;  %v2406_v3 = vpop.f32.mrb[64].mxu0  ;;  %v3961_v51 = vld [vmem:[#allocation18_spill] sm:$0xff] }
 0x6eb   :  { %v2407_v35 = vpop.f32.mrb[65].mxu0 }
 0x6ec   :  { %v2085_v14 = vmul.f32 0.0, %v2069_v55  ;;  %v2070_v32 = vmul.f32 %v2054_v5, %v2054_v5  ;;  %v2408_v48 = vadd.f32 %v2407_v35, %v2406_v3  ;;  %v2409_v44 = vpop.f32.mrb[66].mxu0  ;;  %2467 = vmatmul.mubr.msk.bf16.gmra.mrb[68].mxu1 %vm260_vm1, %v1799_v1  ;;  %v3962_v3 = vld [vmem:[#allocation12_spill] sm:$0xff] }
 0x6ed   :  { %v2410_v6 = vpop.f32.mrb[67].mxu0 }
 0x6ee   :  { %v2106_v42 = vsel %vm260_vm1, %v2085_v14, 0.0  ;;  %v2086_v61 = vmul.f32 0.0, %v2070_v32  ;;  %v1788_v38 = vadd.f32 %v2408_v48, %v3356_v62  ;;  %v2411_v22 = vadd.f32 %v2410_v6, %v2409_v44 }
 0x6ef   :  { %v2107_v4 = vadd.f32 %v2106_v42, %v2105_v11 }
 0x6f0   :  { %v2108_v50 = vsel %vm260_vm1, %v2086_v61, 0.0  ;;  %v2055_v39 = vsub.f32 %v2921_v43, %v1788_v38  ;;  %v1789_v25 = vadd.f32 %v2411_v22, %v3360_v34  ;;  %v3955_v43 = vld [vmem:[#allocation15_spill] sm:$0xff] }
 0x6f1   :  { %v2109_v36 = vadd.f32 %v2108_v50, %v2107_v4  ;;  %v3963_v4 = vld [vmem:[#allocation19_spill] sm:$0xff] }
 0x6f2   :  { %v2071_v2 = vmul.f32 %v2055_v39, %v2055_v39  ;;  %v1800_v19 = vpack.c.bf16 %v1789_v25, %v1788_v38  ;;  %v2056_v60 = vsub.f32 %v3954_v37, %v1789_v25  ;;  %v2412_v57 = vpop.f32.mrb[68].mxu0 }
 0x6f3   :  { %v2413_v20 = vpop.f32.mrb[69].mxu0 }
 0x6f4   :  { %v2087_v63 = vmul.f32 0.0, %v2071_v2  ;;  %v2072_v31 = vmul.f32 %v2056_v60, %v2056_v60  ;;  %v2414_v13 = vadd.f32 %v2413_v20, %v2412_v57  ;;  %v2415_v9 = vpop.f32.mrb[70].mxu0  ;;  %2470 = vmatprep.mubr.msk.bf16.mxu1 %vm260_vm1, %v1800_v19  ;;  %v3965_v19 = vld [vmem:[#allocation20_spill] sm:$0xff] }
 0x6f5   :  { %v2416_v62 = vpop.f32.mrb[71].mxu0 }
 0x6f6   :  { %v2110_v33 = vsel %vm260_vm1, %v2087_v63, 0.0  ;;  %v2088_v56 = vmul.f32 0.0, %v2072_v31  ;;  %v1790_v12 = vadd.f32 %v2414_v13, %v3955_v43  ;;  %v2417_v34 = vadd.f32 %v2416_v62, %v2415_v9  ;;  %v3966_v31 = vld [vmem:[#allocation14_spill] sm:$0xff] }
 0x6f7   :  { %v2111_v0 = vadd.f32 %v2110_v33, %v2109_v36  ;;  %v3964_v36 = vld [vmem:[#allocation13_spill] sm:$0xff] }
 0x6f8   :  { %v2112_v45 = vsel %vm260_vm1, %v2088_v56, 0.0  ;;  %v2057_v7 = vsub.f32 %v3956_v41, %v1790_v12  ;;  %v1791_v27 = vadd.f32 %v2417_v34, %v3957_v49 }
 0x6f9   :  { %v2113_v40 = vadd.f32 %v2112_v45, %v2111_v0 }
 0x6fa   :  { %v2073_v58 = vmul.f32 %v2057_v7, %v2057_v7  ;;  %v1801_v47 = vpack.c.bf16 %v1791_v27, %v1790_v12  ;;  %v2058_v18 = vsub.f32 %v3958_v24, %v1791_v27  ;;  %v2418_v52 = vpop.f32.mrb[72].mxu0 }
 0x6fb   :  { %v2419_v26 = vpop.f32.mrb[73].mxu0 }
 0x6fc   :  { %v2089_v16 = vmul.f32 0.0, %v2073_v58  ;;  %v2074_v17 = vmul.f32 %v2058_v18, %v2058_v18  ;;  %v2420_v10 = vadd.f32 %v2419_v26, %v2418_v52  ;;  %v2421_v8 = vpop.f32.mrb[74].mxu0  ;;  %2471 = vmatmul.mubr.msk.bf16.gmra.mrb[72].mxu1 %vm260_vm1, %v1801_v47 }
 0x6fd   :  { %v2422_v46 = vpop.f32.mrb[75].mxu0 }
 0x6fe   :  { %v2114_v28 = vsel %vm260_vm1, %v2089_v16, 0.0  ;;  %v2090_v23 = vmul.f32 0.0, %v2074_v17  ;;  %v1792_v54 = vadd.f32 %v2420_v10, %v3959_v15  ;;  %v2423_v29 = vadd.f32 %v2422_v46, %v2421_v8 }
 0x6ff   :  { %v2115_v21 = vadd.f32 %v2114_v28, %v2113_v40 }
 0x700   :  { %v2116_v59 = vsel %vm260_vm1, %v2090_v23, 0.0  ;;  %v2059_v30 = vsub.f32 %v3960_v53, %v1792_v54  ;;  %v1793_v11 = vadd.f32 %v2423_v29, %v3961_v51 }
 0x701   :  { %v2117_v55 = vadd.f32 %v2116_v59, %v2115_v21 }
 0x702   :  { %v2075_v1 = vmul.f32 %v2059_v30, %v2059_v30  ;;  %v1802_v5 = vpack.c.bf16 %v1793_v11, %v1792_v54  ;;  %v2060_v35 = vsub.f32 %v3962_v3, %v1793_v11  ;;  %v2424_v14 = vpop.f32.mrb[76].mxu0 }
 0x703   :  { %v2425_v32 = vpop.f32.mrb[77].mxu0 }
 0x704   :  { %v2091_v48 = vmul.f32 0.0, %v2075_v1  ;;  %v2076_v44 = vmul.f32 %v2060_v35, %v2060_v35  ;;  %v2426_v6 = vadd.f32 %v2425_v32, %v2424_v14  ;;  %v2427_v42 = vpop.f32.mrb[78].mxu0  ;;  %2474 = vmatprep.mubr.msk.bf16.mxu1 %vm260_vm1, %v1802_v5 }
 0x705   :  { %v2428_v61 = vpop.f32.mrb[79].mxu0 }
 0x706   :  { %v2118_v38 = vsel %vm260_vm1, %v2091_v48, 0.0  ;;  %v2092_v22 = vmul.f32 0.0, %v2076_v44  ;;  %v1794_v50 = vadd.f32 %v2426_v6, %v3963_v4  ;;  %v2429_v39 = vadd.f32 %v2428_v61, %v2427_v42 }
 0x707   :  { %v2119_v25 = vadd.f32 %v2118_v38, %v2117_v55 }
 0x708   :  { %v2061_v2 = vsub.f32 %v3964_v36, %v1794_v50  ;;  %v1795_v37 = vadd.f32 %v2429_v39, %v3965_v19  ;;  %v2120_v60 = vsel %vm260_vm1, %v2092_v22, 0.0 }
 0x709   :  { %v2121_v57 = vadd.f32 %v2120_v60, %v2119_v25 }
 0x70a   :  { %v2077_v20 = vmul.f32 %v2061_v2, %v2061_v2  ;;  %v1803_v63 = vpack.c.bf16 %v1795_v37, %v1794_v50  ;;  %v2062_v13 = vsub.f32 %v3966_v31, %v1795_v37 }
 0x70c   :  { %v2093_v9 = vmul.f32 0.0, %v2077_v20  ;;  %2475 = vmatmul.mubr.msk.bf16.gmra.mrb[76].mxu1 %vm260_vm1, %v1803_v63  ;;  %v2078_v62 = vmul.f32 %v2062_v13, %v2062_v13 }
 0x70e   :  { %v2094_v33 = vmul.f32 0.0, %v2078_v62  ;;  %v2122_v56 = vsel %vm260_vm1, %v2093_v9, 0.0 }
 0x70f   :  { %v2123_v43 = vadd.f32 %v2122_v56, %v2121_v57 }
 0x710   :  { %v2124_v12 = vsel %vm260_vm1, %v2094_v33, 0.0 }
 0x711   :  { %v2125_v34 = vadd.f32 %v2124_v12, %v2123_v43 }
 0x713   :  { %2126 = vadd.xlane.f32.xlu0 %v2125_v34 }
 0x714   :  { %2743 = shalt.err (!%p2740_p4)
}
 0x715   :  { %s2744_s27 = scalar_lea.hbm %s3924_s9, 8192 }
 0x716   :  { %p2745_p5 = scmp.ne.s32.totalorder %s3924_s9, %s2744_s27  ;;  %p2748_p6 = scmp.lt.u32.totalorder %s2744_s27, %s3924_s9 }
 0x718   :  { %p2750_p7 = pnand %p2748_p6, %p2745_p5 }
 0x71a   :  { %2753 = shalt.err (!%p2750_p7)
}
 0x71b   :  { %s2782_s12 = smov 512   ;;  %s2783_s13 = smov 32   ;;  %v3821_v58 = vld [vmem:[%s3922_s7] ss:$0 sm:$0xff] }
 0x71c   :  { %2150 = dma.vmem_to_hbm [thread:$0]  %s2145_s23, 8192, %s3924_s9, [#allocation3], %s2782_s12, %s2782_s12, %s2783_s13  }
 0x71d   :  { %s2784_s13 = smov [#allocation4]  }
 0x71e   :  { %s2157_s14 = sshll.u32 %s2784_s13, 4  ;;  %s2158_s14 = int_to_ptr.vmem [resolvable:$true] %s2157_s14 }
 0x71f   :  { %s2754_s5 = scalar_lea.vmem %s2158_s14, 128  ;;  %p2759_p9 = scmp.lt.s32.totalorder %s2158_s14, %s2158_s14 }
 0x720   :  { %p2755_p8 = scmp.ne.s32.totalorder %s2158_s14, %s2754_s5  ;;  %p2760_p10 = scmp.lt.s32.totalorder %s2754_s5, %s2754_s5 }
 0x722   :  { %p2761_p11 = por %p2760_p10, %p2759_p9 }
 0x724   :  { %p2762_p12 = pnand %p2761_p11, %p2755_p8 }
 0x7a0   :  { %v2127_v0 = vpop.xlane.xlu0 %2126 }
 0x7a1   :  { %v2128_v45 = vrot.slane %v2127_v0, 4 }
 0x7a3   :  { %v2129_v41 = vadd.f32 %v2128_v45, %v2127_v0 }
 0x7a5   :  { %v2130_v7 = vrot.slane %v2129_v41, 2 }
 0x7a7   :  { %v2131_v49 = vadd.f32 %v2130_v7, %v2129_v41 }
 0x7a9   :  { %v2132_v27 = vrot.slane %v2131_v49, 1 }
 0x7ab   :  { %v2133_v40 = vadd.f32 %v2132_v27, %v2131_v49 }
 0x7ad   :  { %2478 = vpush %v2133_v40 }
 0x7af   :  { %v2464_v47 = vpop.f32.mrb[64].mxu1 }
 0x7b0   :  { %v1894_v24 = vadd.f32 %v2464_v47, %v3821_v58  ;;  %v1885_v18 = vpop.f32.mrb[65].mxu1 }
 0x7b1   :  { %v1886_v52 = vadd.f32 %v3821_v58, %v1885_v18  ;;  %v2465_v26 = vpop.f32.mrb[66].mxu1 }
 0x7b2   :  { %1950 = vst.msk [vmem:[%s3923_s8 + $0x10] sm:$0xff] %vm106_vm0, %v1894_v24  ;;  %v1897_v16 = vadd.f32 %v2465_v26, %v3821_v58  ;;  %v1888_v17 = vpop.f32.mrb[67].mxu1 }
 0x7b3   :  { %1948 = vst.msk [vmem:[%s3923_s8] sm:$0xff] %vm106_vm0, %v1886_v52  ;;  %v1889_v10 = vadd.f32 %v3821_v58, %v1888_v17 }
 0x7b4   :  { %1951 = vst.msk [vmem:[%s3923_s8 + $0x18] sm:$0xff] %vm106_vm0, %v1897_v16 }
 0x7b5   :  { %1949 = vst.msk [vmem:[%s3923_s8 + $0x8] sm:$0xff] %vm106_vm0, %v1889_v10 }
 0x7bf   :  { %v2468_v8 = vpop.f32.mrb[68].mxu1 }
 0x7c0   :  { %v1910_v46 = vadd.f32 %v2468_v8, %v3821_v58  ;;  %v1901_v28 = vpop.f32.mrb[69].mxu1 }
 0x7c1   :  { %v1902_v23 = vadd.f32 %v3821_v58, %v1901_v28  ;;  %v2469_v15 = vpop.f32.mrb[70].mxu1 }
 0x7c2   :  { %1954 = vst.msk [vmem:[%s3923_s8 + $0x30] sm:$0xff] %vm106_vm0, %v1910_v46  ;;  %v1913_v54 = vadd.f32 %v2469_v15, %v3821_v58  ;;  %v1904_v29 = vpop.f32.mrb[71].mxu1 }
 0x7c3   :  { %1952 = vst.msk [vmem:[%s3923_s8 + $0x20] sm:$0xff] %vm106_vm0, %v1902_v23  ;;  %v1905_v21 = vadd.f32 %v3821_v58, %v1904_v29 }
 0x7c4   :  { %1955 = vst.msk [vmem:[%s3923_s8 + $0x38] sm:$0xff] %vm106_vm0, %v1913_v54 }
 0x7c5   :  { %1953 = vst.msk [vmem:[%s3923_s8 + $0x28] sm:$0xff] %vm106_vm0, %v1905_v21 }
 0x7cf   :  { %v2472_v59 = vpop.f32.mrb[72].mxu1 }
 0x7d0   :  { %v1926_v53 = vadd.f32 %v2472_v59, %v3821_v58  ;;  %v1917_v30 = vpop.f32.mrb[73].mxu1 }
 0x7d1   :  { %v1918_v51 = vadd.f32 %v3821_v58, %v1917_v30  ;;  %v2473_v11 = vpop.f32.mrb[74].mxu1 }
 0x7d2   :  { %1958 = vst.msk [vmem:[%s3923_s8 + $0x50] sm:$0xff] %vm106_vm0, %v1926_v53  ;;  %v1929_v55 = vadd.f32 %v2473_v11, %v3821_v58  ;;  %v1920_v1 = vpop.f32.mrb[75].mxu1 }
 0x7d3   :  { %1956 = vst.msk [vmem:[%s3923_s8 + $0x40] sm:$0xff] %vm106_vm0, %v1918_v51  ;;  %v1921_v5 = vadd.f32 %v3821_v58, %v1920_v1 }
 0x7d4   :  { %1959 = vst.msk [vmem:[%s3923_s8 + $0x58] sm:$0xff] %vm106_vm0, %v1929_v55 }
 0x7d5   :  { %1957 = vst.msk [vmem:[%s3923_s8 + $0x48] sm:$0xff] %vm106_vm0, %v1921_v5 }
 0x7de   :  { %s2479_s15 = spop %2478 }
 0x7df   :  { %v2135_v3 = vstv %s2479_s15  ;;  %v2476_v35 = vpop.f32.mrb[76].mxu1 }
 0x7e0   :  { %2136 = vst [vmem:[#allocation4] sm:$0xff] %v2135_v3  ;;  %v1942_v14 = vadd.f32 %v2476_v35, %v3821_v58  ;;  %v1933_v32 = vpop.f32.mrb[77].mxu1 }
 0x7e1   :  { %v1934_v48 = vadd.f32 %v3821_v58, %v1933_v32  ;;  %v2477_v44 = vpop.f32.mrb[78].mxu1 }
 0x7e2   :  { %2765 = shalt.err (!%p2762_p12)
}
 0x7e3   :  { %s2766_s3 = scalar_lea.hbm %s3925_s10, 128 }
 0x7e4   :  { %p2767_p13 = scmp.ne.s32.totalorder %s3925_s10, %s2766_s3  ;;  %p2770_p0 = scmp.lt.u32.totalorder %s2766_s3, %s3925_s10 }
 0x7e6   :  { %p2772_p1 = pnand %p2770_p0, %p2767_p13 }
 0x7e8   :  { %2775 = shalt.err (!%p2772_p1)
}
 0x7e9   :  { %2160 = dma.vmem_to_hbm [thread:$0]  %s2158_s14, 128, %s3925_s10, [#allocation5]   ;;  %1962 = vst.msk [vmem:[%s3923_s8 + $0x70] sm:$0xff] %vm106_vm0, %v1942_v14  ;;  %v1945_v6 = vadd.f32 %v2477_v44, %v3821_v58  ;;  %v1936_v42 = vpop.f32.mrb[79].mxu1  ;;  %1960 = vst.msk [vmem:[%s3923_s8 + $0x60] sm:$0xff] %vm106_vm0, %v1934_v48 }
 0x7ea   :  { %v1937_v61 = vadd.f32 %v3821_v58, %v1936_v42 }
 0x7eb   :  { %1963 = vst.msk [vmem:[%s3923_s8 + $0x78] sm:$0xff] %vm106_vm0, %v1945_v6 }
 0x7ec   :  { %1961 = vst.msk [vmem:[%s3923_s8 + $0x68] sm:$0xff] %vm106_vm0, %v1937_v61 }
 0x7ed   :  { %2776 = dma.done.wait [#allocation3], 8192  }
 0x7ee   :  { %2777 = vsyncadd [#allocation3], 4294959104 }
 0x7ef   :  { %2778 = dma.done.wait [#allocation5], 128  }
 0x7f0   :  { %2779 = vsyncadd [#allocation5], 4294967168 }
 0x7f1   :  { %2169 = vsyncpa [#allocation3], 1 }
 0x7f2   :  { %2170 = vsyncpa [#allocation5], 1 }

</bundles_post_ra>
